<compile_context>
chip_gen: v7x
topology: tpu7x:2x2x1
jax: 0.10.0
libtpu: 0.0.40
codegen_flags: <defaults>
</compile_context>

<pallas_src>
import functools

import jax
import jax.numpy as jnp
from jax.experimental import pallas as pl
from jax.experimental.pallas import tpu as pltpu

_EPS = 1e-6
_LANE = 128
_MIN_TILE = 8 * _LANE          # smallest fully (8,128)-aligned batch tile

# Static function list (matches PtaParfam(functions=[sin, tanh]) -> ['id','sin','tanh'])
_FUNCS = (
    ("id", lambda v: v),
    ("sin", jnp.sin),
    ("tanh", jnp.tanh),
)
_F = len(_FUNCS)


def _pta_parfam_kernel(x_ref, e_in_ref, c_in_ref, e_out_ref, c_out_ref, o_ref,
                       *, K, D):
    """One batch tile; batch is laid out on the (sublane, lane) axes.

    x_ref     : (D, TS, 128) f32 VMEM  -- x_ref[j, s, l] = x[batch_row, j]
    e_in_ref  : (F*K*D,)     f32 SMEM  -- inner exponents, flattened
    c_in_ref  : (F*K,)       f32 SMEM  -- inner monomial coefficients
    e_out_ref : (K*F,)       f32 SMEM  -- outer exponents
    c_out_ref : (K,)         f32 SMEM  -- outer monomial coefficients
    o_ref     : (TS, 128)    f32 VMEM  -- one output value per batch row
    """
    x = x_ref[...]                                  # (D, TS, 128)
    log_x = jnp.log(jnp.abs(x) + _EPS)              # (D, TS, 128)

    # Inner PtaGrowth blocks + elementwise functions.  All contractions are
    # unrolled SMEM-scalar x vector MACs (no MXU round trips for D=8, K=3).
    log_feats = []
    for f, (_, fn) in enumerate(_FUNCS):
        inner = None
        for k in range(K):
            logit = None
            for j in range(D):
                term = e_in_ref[f * K * D + k * D + j] * log_x[j]   # (TS, 128)
                logit = term if logit is None else logit + term
            mono = c_in_ref[f * K + k] * jnp.exp(logit)             # (TS, 128)
            inner = mono if inner is None else inner + mono
        feat = fn(inner)                                            # (TS, 128)
        log_feats.append(jnp.log(jnp.abs(feat) + _EPS))

    # Outer PtaGrowth block over the F feature sheets (no concat / XLU needed).
    out = None
    for k in range(K):
        logit = None
        for f in range(_F):
            term = e_out_ref[k * _F + f] * log_feats[f]
            logit = term if logit is None else logit + term
        mono = c_out_ref[k] * jnp.exp(logit)
        out = mono if out is None else out + mono

    o_ref[...] = out                                                # dense store


def pta_parfam_forward(x, e_in, c_in, e_out, c_out, *, tile_b=2048):
    """Pallas-call wrapper.  x: (B, D) float32 -> (B, 1) float32."""
    B, D = x.shape
    F, K, _ = e_in.shape
    assert F == _F, "parameter F must match the static function list"
    assert tile_b % _MIN_TILE == 0, "tile_b must be a multiple of 8*128"

    # Don't over-pad small batches; keep >=2 grid steps when possible so a v7x
    # chip can shard the 'parallel' axis across both TensorCores.
    tile_b = min(tile_b, pl.cdiv(B, _MIN_TILE) * _MIN_TILE)
    if pl.cdiv(B, tile_b) < 2 and tile_b > _MIN_TILE:
        tile_b = pl.cdiv(tile_b, 2 * _MIN_TILE) * _MIN_TILE
    ts = tile_b // _LANE                    # sublane rows per tile (multiple of 8)

    n_tiles = pl.cdiv(B, tile_b)
    b_pad = n_tiles * tile_b

    # Pad with ones (log(1+eps) ~ 0 keeps padded rows finite) and put the batch
    # on the (sublane, lane) axes:  x_t[d, r, l] == x[r*128 + l, d].
    xp = x if b_pad == B else jnp.concatenate(
        [x, jnp.ones((b_pad - B, D), x.dtype)], axis=0)
    x_t = xp.T.reshape(D, b_pad // _LANE, _LANE).astype(jnp.float32)

    # Tiny parameter tensors: flatten 1-D and keep them in SMEM.
    e_in_flat = e_in.astype(jnp.float32).reshape(-1)     # (F*K*D,)
    c_in_flat = c_in.astype(jnp.float32).reshape(-1)     # (F*K,)
    e_out_flat = e_out.astype(jnp.float32).reshape(-1)   # (K*F,)
    c_out_flat = c_out.astype(jnp.float32).reshape(-1)   # (K,)

    kernel = functools.partial(_pta_parfam_kernel, K=K, D=D)
    smem_spec = pl.BlockSpec(memory_space=pltpu.MemorySpace.SMEM)

    out2d = pl.pallas_call(
        kernel,
        out_shape=jax.ShapeDtypeStruct((b_pad // _LANE, _LANE), jnp.float32),
        grid_spec=pltpu.PrefetchScalarGridSpec(
            num_scalar_prefetch=0,
            grid=(n_tiles,),
            in_specs=[
                pl.BlockSpec((D, ts, _LANE), lambda i: (0, i, 0)),   # x tile
                smem_spec,                                           # inner exponents
                smem_spec,                                           # inner coeffs
                smem_spec,                                           # outer exponents
                smem_spec,                                           # outer coeffs
            ],
            out_specs=pl.BlockSpec((ts, _LANE), lambda i: (i, 0)),   # lane-dense
        ),
        compiler_params=pltpu.CompilerParams(
            dimension_semantics=("parallel",),
        ),
    )(x_t, e_in_flat, c_in_flat, e_out_flat, c_out_flat)

    # (b_pad//128, 128) in row-major order == batch order; drop padding.
    return out2d.reshape(b_pad, 1)[:B]


def _reference_forward(x, e_in, c_in, e_out, c_out):
    """Plain-JAX reference (pure elementwise + reductions, full f32 precision)."""
    log_x = jnp.log(jnp.abs(x) + _EPS)                                   # (B, D)
    feats = []
    for i, (_, fn) in enumerate(_FUNCS):
        logits = jnp.sum(log_x[:, None, :] * e_in[i][None, :, :], axis=-1)   # (B, K)
        inner = jnp.sum(jnp.exp(logits) * c_in[i][:, 0][None, :],
                        axis=-1, keepdims=True)                              # (B, 1)
        feats.append(fn(inner))
    cat = jnp.concatenate(feats, axis=1)                                     # (B, F)
    log_cat = jnp.log(jnp.abs(cat) + _EPS)
    logits_o = jnp.sum(log_cat[:, None, :] * e_out[None, :, :], axis=-1)     # (B, K)
    return jnp.sum(jnp.exp(logits_o) * c_out[:, 0][None, :],
                   axis=-1, keepdims=True)                                   # (B, 1)


if __name__ == "__main__":
    # Small, deterministic problem sizes consistent with the module:
    #   input_dim D = 8, max_number_of_growth_blocks K = 3, F = 3 functions,
    #   batch = 2048 (two lane/sublane-dense tiles of 1024 rows).
    B, D, K = 2048, 8, 3

    key = jax.random.PRNGKey(0)
    kx, ke_in, kc_in, ke_out, kc_out = jax.random.split(key, 5)

    x = jax.random.normal(kx, (B, D), dtype=jnp.float32)
    # Deterministic synthetic "trained" parameters.
    e_in = 0.3 * jax.random.normal(ke_in, (_F, K, D), dtype=jnp.float32)
    c_in = 0.5 * jax.random.normal(kc_in, (_F, K, 1), dtype=jnp.float32)
    e_out = 0.3 * jax.random.normal(ke_out, (K, _F), dtype=jnp.float32)
    c_out = 0.5 * jax.random.normal(kc_out, (K, 1), dtype=jnp.float32)

    out = jax.block_until_ready(pta_parfam_forward(x, e_in, c_in, e_out, c_out))
    ref = _reference_forward(x, e_in, c_in, e_out, c_out)
    assert out.shape == (B, 1)
    assert jnp.allclose(out, ref, rtol=1e-3, atol=1e-4), "Pallas kernel mismatch vs reference"

    # Ragged batch (not a multiple of the tile): exercises the padding path.
    B2 = 1748
    out2 = jax.block_until_ready(
        pta_parfam_forward(x[:B2], e_in, c_in, e_out, c_out))
    ref2 = _reference_forward(x[:B2], e_in, c_in, e_out, c_out)
    assert out2.shape == (B2, 1)
    assert jnp.allclose(out2, ref2, rtol=1e-3, atol=1e-4), "ragged-batch mismatch"

    print("KERNEL_OK")
</pallas_src>

<mosaic_0001>
module attributes {stable_mosaic.version = 11 : i64} {
  func.func @_pta_parfam_kernel(%arg0: i32, %arg1: memref<8x8x128xf32, #tpu.memory_space<vmem>>, %arg2: memref<72xf32, #tpu.memory_space<smem>>, %arg3: memref<9xf32, #tpu.memory_space<smem>>, %arg4: memref<9xf32, #tpu.memory_space<smem>>, %arg5: memref<3xf32, #tpu.memory_space<smem>>, %arg6: memref<8x128xf32, #tpu.memory_space<vmem>>) attributes {dimension_semantics = [#tpu.dimension_semantics<parallel>], iteration_bounds = array<i64: 2>, scalar_prefetch = 0 : i64, scratch_operands = 0 : i64, tpu.core_type = #tpu.core_type<tc>, window_params = [{transform_indices = @transform_0, window_bounds = array<i64: 8, 8, 128>}, {transform_indices = @transform_1, window_bounds = array<i64: 72>}, {transform_indices = @transform_2, window_bounds = array<i64: 9>}, {transform_indices = @transform_3, window_bounds = array<i64: 9>}, {transform_indices = @transform_4, window_bounds = array<i64: 3>}, {transform_indices = @transform_5, window_bounds = array<i64: 8, 128>}]} {
    %c0 = arith.constant 0 : index
    %c0_0 = arith.constant 0 : index
    %c0_1 = arith.constant 0 : index
    %0 = vector.load %arg1[%c0, %c0_0, %c0_1] : memref<8x8x128xf32, #tpu.memory_space<vmem>>, vector<8x8x128xf32>
    %1 = math.absf %0 : vector<8x8x128xf32>
    %cst = arith.constant 9.99999997E-7 : f32
    %2 = vector.broadcast %cst : f32 to vector<8x8x128xf32>
    %3 = arith.addf %1, %2 : vector<8x8x128xf32>
    %4 = math.log %3 : vector<8x8x128xf32>
    %c0_2 = arith.constant 0 : index
    %5 = memref.load %arg2[%c0_2] : memref<72xf32, #tpu.memory_space<smem>>
    %6 = vector.extract_strided_slice %4 {offsets = [0, 0, 0], sizes = [1, 8, 128], strides = [1, 1, 1]} : vector<8x8x128xf32> to vector<1x8x128xf32>
    %7 = vector.shape_cast %6 : vector<1x8x128xf32> to vector<8x128xf32>
    %8 = vector.broadcast %5 : f32 to vector<8x128xf32>
    %9 = arith.mulf %8, %7 : vector<8x128xf32>
    %c1 = arith.constant 1 : index
    %10 = memref.load %arg2[%c1] : memref<72xf32, #tpu.memory_space<smem>>
    %11 = vector.extract_strided_slice %4 {offsets = [1, 0, 0], sizes = [1, 8, 128], strides = [1, 1, 1]} : vector<8x8x128xf32> to vector<1x8x128xf32>
    %12 = vector.shape_cast %11 : vector<1x8x128xf32> to vector<8x128xf32>
    %13 = vector.broadcast %10 : f32 to vector<8x128xf32>
    %14 = arith.mulf %13, %12 : vector<8x128xf32>
    %15 = arith.addf %9, %14 : vector<8x128xf32>
    %c2 = arith.constant 2 : index
    %16 = memref.load %arg2[%c2] : memref<72xf32, #tpu.memory_space<smem>>
    %17 = vector.extract_strided_slice %4 {offsets = [2, 0, 0], sizes = [1, 8, 128], strides = [1, 1, 1]} : vector<8x8x128xf32> to vector<1x8x128xf32>
    %18 = vector.shape_cast %17 : vector<1x8x128xf32> to vector<8x128xf32>
    %19 = vector.broadcast %16 : f32 to vector<8x128xf32>
    %20 = arith.mulf %19, %18 : vector<8x128xf32>
    %21 = arith.addf %15, %20 : vector<8x128xf32>
    %c3 = arith.constant 3 : index
    %22 = memref.load %arg2[%c3] : memref<72xf32, #tpu.memory_space<smem>>
    %23 = vector.extract_strided_slice %4 {offsets = [3, 0, 0], sizes = [1, 8, 128], strides = [1, 1, 1]} : vector<8x8x128xf32> to vector<1x8x128xf32>
    %24 = vector.shape_cast %23 : vector<1x8x128xf32> to vector<8x128xf32>
    %25 = vector.broadcast %22 : f32 to vector<8x128xf32>
    %26 = arith.mulf %25, %24 : vector<8x128xf32>
    %27 = arith.addf %21, %26 : vector<8x128xf32>
    %c4 = arith.constant 4 : index
    %28 = memref.load %arg2[%c4] : memref<72xf32, #tpu.memory_space<smem>>
    %29 = vector.extract_strided_slice %4 {offsets = [4, 0, 0], sizes = [1, 8, 128], strides = [1, 1, 1]} : vector<8x8x128xf32> to vector<1x8x128xf32>
    %30 = vector.shape_cast %29 : vector<1x8x128xf32> to vector<8x128xf32>
    %31 = vector.broadcast %28 : f32 to vector<8x128xf32>
    %32 = arith.mulf %31, %30 : vector<8x128xf32>
    %33 = arith.addf %27, %32 : vector<8x128xf32>
    %c5 = arith.constant 5 : index
    %34 = memref.load %arg2[%c5] : memref<72xf32, #tpu.memory_space<smem>>
    %35 = vector.extract_strided_slice %4 {offsets = [5, 0, 0], sizes = [1, 8, 128], strides = [1, 1, 1]} : vector<8x8x128xf32> to vector<1x8x128xf32>
    %36 = vector.shape_cast %35 : vector<1x8x128xf32> to vector<8x128xf32>
    %37 = vector.broadcast %34 : f32 to vector<8x128xf32>
    %38 = arith.mulf %37, %36 : vector<8x128xf32>
    %39 = arith.addf %33, %38 : vector<8x128xf32>
    %c6 = arith.constant 6 : index
    %40 = memref.load %arg2[%c6] : memref<72xf32, #tpu.memory_space<smem>>
    %41 = vector.extract_strided_slice %4 {offsets = [6, 0, 0], sizes = [1, 8, 128], strides = [1, 1, 1]} : vector<8x8x128xf32> to vector<1x8x128xf32>
    %42 = vector.shape_cast %41 : vector<1x8x128xf32> to vector<8x128xf32>
    %43 = vector.broadcast %40 : f32 to vector<8x128xf32>
    %44 = arith.mulf %43, %42 : vector<8x128xf32>
    %45 = arith.addf %39, %44 : vector<8x128xf32>
    %c7 = arith.constant 7 : index
    %46 = memref.load %arg2[%c7] : memref<72xf32, #tpu.memory_space<smem>>
    %47 = vector.extract_strided_slice %4 {offsets = [7, 0, 0], sizes = [1, 8, 128], strides = [1, 1, 1]} : vector<8x8x128xf32> to vector<1x8x128xf32>
    %48 = vector.shape_cast %47 : vector<1x8x128xf32> to vector<8x128xf32>
    %49 = vector.broadcast %46 : f32 to vector<8x128xf32>
    %50 = arith.mulf %49, %48 : vector<8x128xf32>
    %51 = arith.addf %45, %50 : vector<8x128xf32>
    %c0_3 = arith.constant 0 : index
    %52 = memref.load %arg3[%c0_3] : memref<9xf32, #tpu.memory_space<smem>>
    %53 = math.exp %51 : vector<8x128xf32>
    %54 = vector.broadcast %52 : f32 to vector<8x128xf32>
    %55 = arith.mulf %54, %53 : vector<8x128xf32>
    %c8 = arith.constant 8 : index
    %56 = memref.load %arg2[%c8] : memref<72xf32, #tpu.memory_space<smem>>
    %57 = vector.extract_strided_slice %4 {offsets = [0, 0, 0], sizes = [1, 8, 128], strides = [1, 1, 1]} : vector<8x8x128xf32> to vector<1x8x128xf32>
    %58 = vector.shape_cast %57 : vector<1x8x128xf32> to vector<8x128xf32>
    %59 = vector.broadcast %56 : f32 to vector<8x128xf32>
    %60 = arith.mulf %59, %58 : vector<8x128xf32>
    %c9 = arith.constant 9 : index
    %61 = memref.load %arg2[%c9] : memref<72xf32, #tpu.memory_space<smem>>
    %62 = vector.extract_strided_slice %4 {offsets = [1, 0, 0], sizes = [1, 8, 128], strides = [1, 1, 1]} : vector<8x8x128xf32> to vector<1x8x128xf32>
    %63 = vector.shape_cast %62 : vector<1x8x128xf32> to vector<8x128xf32>
    %64 = vector.broadcast %61 : f32 to vector<8x128xf32>
    %65 = arith.mulf %64, %63 : vector<8x128xf32>
    %66 = arith.addf %60, %65 : vector<8x128xf32>
    %c10 = arith.constant 10 : index
    %67 = memref.load %arg2[%c10] : memref<72xf32, #tpu.memory_space<smem>>
    %68 = vector.extract_strided_slice %4 {offsets = [2, 0, 0], sizes = [1, 8, 128], strides = [1, 1, 1]} : vector<8x8x128xf32> to vector<1x8x128xf32>
    %69 = vector.shape_cast %68 : vector<1x8x128xf32> to vector<8x128xf32>
    %70 = vector.broadcast %67 : f32 to vector<8x128xf32>
    %71 = arith.mulf %70, %69 : vector<8x128xf32>
    %72 = arith.addf %66, %71 : vector<8x128xf32>
    %c11 = arith.constant 11 : index
    %73 = memref.load %arg2[%c11] : memref<72xf32, #tpu.memory_space<smem>>
    %74 = vector.extract_strided_slice %4 {offsets = [3, 0, 0], sizes = [1, 8, 128], strides = [1, 1, 1]} : vector<8x8x128xf32> to vector<1x8x128xf32>
    %75 = vector.shape_cast %74 : vector<1x8x128xf32> to vector<8x128xf32>
    %76 = vector.broadcast %73 : f32 to vector<8x128xf32>
    %77 = arith.mulf %76, %75 : vector<8x128xf32>
    %78 = arith.addf %72, %77 : vector<8x128xf32>
    %c12 = arith.constant 12 : index
    %79 = memref.load %arg2[%c12] : memref<72xf32, #tpu.memory_space<smem>>
    %80 = vector.extract_strided_slice %4 {offsets = [4, 0, 0], sizes = [1, 8, 128], strides = [1, 1, 1]} : vector<8x8x128xf32> to vector<1x8x128xf32>
    %81 = vector.shape_cast %80 : vector<1x8x128xf32> to vector<8x128xf32>
    %82 = vector.broadcast %79 : f32 to vector<8x128xf32>
    %83 = arith.mulf %82, %81 : vector<8x128xf32>
    %84 = arith.addf %78, %83 : vector<8x128xf32>
    %c13 = arith.constant 13 : index
    %85 = memref.load %arg2[%c13] : memref<72xf32, #tpu.memory_space<smem>>
    %86 = vector.extract_strided_slice %4 {offsets = [5, 0, 0], sizes = [1, 8, 128], strides = [1, 1, 1]} : vector<8x8x128xf32> to vector<1x8x128xf32>
    %87 = vector.shape_cast %86 : vector<1x8x128xf32> to vector<8x128xf32>
    %88 = vector.broadcast %85 : f32 to vector<8x128xf32>
    %89 = arith.mulf %88, %87 : vector<8x128xf32>
    %90 = arith.addf %84, %89 : vector<8x128xf32>
    %c14 = arith.constant 14 : index
    %91 = memref.load %arg2[%c14] : memref<72xf32, #tpu.memory_space<smem>>
    %92 = vector.extract_strided_slice %4 {offsets = [6, 0, 0], sizes = [1, 8, 128], strides = [1, 1, 1]} : vector<8x8x128xf32> to vector<1x8x128xf32>
    %93 = vector.shape_cast %92 : vector<1x8x128xf32> to vector<8x128xf32>
    %94 = vector.broadcast %91 : f32 to vector<8x128xf32>
    %95 = arith.mulf %94, %93 : vector<8x128xf32>
    %96 = arith.addf %90, %95 : vector<8x128xf32>
    %c15 = arith.constant 15 : index
    %97 = memref.load %arg2[%c15] : memref<72xf32, #tpu.memory_space<smem>>
    %98 = vector.extract_strided_slice %4 {offsets = [7, 0, 0], sizes = [1, 8, 128], strides = [1, 1, 1]} : vector<8x8x128xf32> to vector<1x8x128xf32>
    %99 = vector.shape_cast %98 : vector<1x8x128xf32> to vector<8x128xf32>
    %100 = vector.broadcast %97 : f32 to vector<8x128xf32>
    %101 = arith.mulf %100, %99 : vector<8x128xf32>
    %102 = arith.addf %96, %101 : vector<8x128xf32>
    %c1_4 = arith.constant 1 : index
    %103 = memref.load %arg3[%c1_4] : memref<9xf32, #tpu.memory_space<smem>>
    %104 = math.exp %102 : vector<8x128xf32>
    %105 = vector.broadcast %103 : f32 to vector<8x128xf32>
    %106 = arith.mulf %105, %104 : vector<8x128xf32>
    %107 = arith.addf %55, %106 : vector<8x128xf32>
    %c16 = arith.constant 16 : index
    %108 = memref.load %arg2[%c16] : memref<72xf32, #tpu.memory_space<smem>>
    %109 = vector.extract_strided_slice %4 {offsets = [0, 0, 0], sizes = [1, 8, 128], strides = [1, 1, 1]} : vector<8x8x128xf32> to vector<1x8x128xf32>
    %110 = vector.shape_cast %109 : vector<1x8x128xf32> to vector<8x128xf32>
    %111 = vector.broadcast %108 : f32 to vector<8x128xf32>
    %112 = arith.mulf %111, %110 : vector<8x128xf32>
    %c17 = arith.constant 17 : index
    %113 = memref.load %arg2[%c17] : memref<72xf32, #tpu.memory_space<smem>>
    %114 = vector.extract_strided_slice %4 {offsets = [1, 0, 0], sizes = [1, 8, 128], strides = [1, 1, 1]} : vector<8x8x128xf32> to vector<1x8x128xf32>
    %115 = vector.shape_cast %114 : vector<1x8x128xf32> to vector<8x128xf32>
    %116 = vector.broadcast %113 : f32 to vector<8x128xf32>
    %117 = arith.mulf %116, %115 : vector<8x128xf32>
    %118 = arith.addf %112, %117 : vector<8x128xf32>
    %c18 = arith.constant 18 : index
    %119 = memref.load %arg2[%c18] : memref<72xf32, #tpu.memory_space<smem>>
    %120 = vector.extract_strided_slice %4 {offsets = [2, 0, 0], sizes = [1, 8, 128], strides = [1, 1, 1]} : vector<8x8x128xf32> to vector<1x8x128xf32>
    %121 = vector.shape_cast %120 : vector<1x8x128xf32> to vector<8x128xf32>
    %122 = vector.broadcast %119 : f32 to vector<8x128xf32>
    %123 = arith.mulf %122, %121 : vector<8x128xf32>
    %124 = arith.addf %118, %123 : vector<8x128xf32>
    %c19 = arith.constant 19 : index
    %125 = memref.load %arg2[%c19] : memref<72xf32, #tpu.memory_space<smem>>
    %126 = vector.extract_strided_slice %4 {offsets = [3, 0, 0], sizes = [1, 8, 128], strides = [1, 1, 1]} : vector<8x8x128xf32> to vector<1x8x128xf32>
    %127 = vector.shape_cast %126 : vector<1x8x128xf32> to vector<8x128xf32>
    %128 = vector.broadcast %125 : f32 to vector<8x128xf32>
    %129 = arith.mulf %128, %127 : vector<8x128xf32>
    %130 = arith.addf %124, %129 : vector<8x128xf32>
    %c20 = arith.constant 20 : index
    %131 = memref.load %arg2[%c20] : memref<72xf32, #tpu.memory_space<smem>>
    %132 = vector.extract_strided_slice %4 {offsets = [4, 0, 0], sizes = [1, 8, 128], strides = [1, 1, 1]} : vector<8x8x128xf32> to vector<1x8x128xf32>
    %133 = vector.shape_cast %132 : vector<1x8x128xf32> to vector<8x128xf32>
    %134 = vector.broadcast %131 : f32 to vector<8x128xf32>
    %135 = arith.mulf %134, %133 : vector<8x128xf32>
    %136 = arith.addf %130, %135 : vector<8x128xf32>
    %c21 = arith.constant 21 : index
    %137 = memref.load %arg2[%c21] : memref<72xf32, #tpu.memory_space<smem>>
    %138 = vector.extract_strided_slice %4 {offsets = [5, 0, 0], sizes = [1, 8, 128], strides = [1, 1, 1]} : vector<8x8x128xf32> to vector<1x8x128xf32>
    %139 = vector.shape_cast %138 : vector<1x8x128xf32> to vector<8x128xf32>
    %140 = vector.broadcast %137 : f32 to vector<8x128xf32>
    %141 = arith.mulf %140, %139 : vector<8x128xf32>
    %142 = arith.addf %136, %141 : vector<8x128xf32>
    %c22 = arith.constant 22 : index
    %143 = memref.load %arg2[%c22] : memref<72xf32, #tpu.memory_space<smem>>
    %144 = vector.extract_strided_slice %4 {offsets = [6, 0, 0], sizes = [1, 8, 128], strides = [1, 1, 1]} : vector<8x8x128xf32> to vector<1x8x128xf32>
    %145 = vector.shape_cast %144 : vector<1x8x128xf32> to vector<8x128xf32>
    %146 = vector.broadcast %143 : f32 to vector<8x128xf32>
    %147 = arith.mulf %146, %145 : vector<8x128xf32>
    %148 = arith.addf %142, %147 : vector<8x128xf32>
    %c23 = arith.constant 23 : index
    %149 = memref.load %arg2[%c23] : memref<72xf32, #tpu.memory_space<smem>>
    %150 = vector.extract_strided_slice %4 {offsets = [7, 0, 0], sizes = [1, 8, 128], strides = [1, 1, 1]} : vector<8x8x128xf32> to vector<1x8x128xf32>
    %151 = vector.shape_cast %150 : vector<1x8x128xf32> to vector<8x128xf32>
    %152 = vector.broadcast %149 : f32 to vector<8x128xf32>
    %153 = arith.mulf %152, %151 : vector<8x128xf32>
    %154 = arith.addf %148, %153 : vector<8x128xf32>
    %c2_5 = arith.constant 2 : index
    %155 = memref.load %arg3[%c2_5] : memref<9xf32, #tpu.memory_space<smem>>
    %156 = math.exp %154 : vector<8x128xf32>
    %157 = vector.broadcast %155 : f32 to vector<8x128xf32>
    %158 = arith.mulf %157, %156 : vector<8x128xf32>
    %159 = arith.addf %107, %158 : vector<8x128xf32>
    %160 = math.absf %159 : vector<8x128xf32>
    %cst_6 = arith.constant 9.99999997E-7 : f32
    %161 = vector.broadcast %cst_6 : f32 to vector<8x128xf32>
    %162 = arith.addf %160, %161 : vector<8x128xf32>
    %163 = math.log %162 : vector<8x128xf32>
    %c24 = arith.constant 24 : index
    %164 = memref.load %arg2[%c24] : memref<72xf32, #tpu.memory_space<smem>>
    %165 = vector.extract_strided_slice %4 {offsets = [0, 0, 0], sizes = [1, 8, 128], strides = [1, 1, 1]} : vector<8x8x128xf32> to vector<1x8x128xf32>
    %166 = vector.shape_cast %165 : vector<1x8x128xf32> to vector<8x128xf32>
    %167 = vector.broadcast %164 : f32 to vector<8x128xf32>
    %168 = arith.mulf %167, %166 : vector<8x128xf32>
    %c25 = arith.constant 25 : index
    %169 = memref.load %arg2[%c25] : memref<72xf32, #tpu.memory_space<smem>>
    %170 = vector.extract_strided_slice %4 {offsets = [1, 0, 0], sizes = [1, 8, 128], strides = [1, 1, 1]} : vector<8x8x128xf32> to vector<1x8x128xf32>
    %171 = vector.shape_cast %170 : vector<1x8x128xf32> to vector<8x128xf32>
    %172 = vector.broadcast %169 : f32 to vector<8x128xf32>
    %173 = arith.mulf %172, %171 : vector<8x128xf32>
    %174 = arith.addf %168, %173 : vector<8x128xf32>
    %c26 = arith.constant 26 : index
    %175 = memref.load %arg2[%c26] : memref<72xf32, #tpu.memory_space<smem>>
    %176 = vector.extract_strided_slice %4 {offsets = [2, 0, 0], sizes = [1, 8, 128], strides = [1, 1, 1]} : vector<8x8x128xf32> to vector<1x8x128xf32>
    %177 = vector.shape_cast %176 : vector<1x8x128xf32> to vector<8x128xf32>
    %178 = vector.broadcast %175 : f32 to vector<8x128xf32>
    %179 = arith.mulf %178, %177 : vector<8x128xf32>
    %180 = arith.addf %174, %179 : vector<8x128xf32>
    %c27 = arith.constant 27 : index
    %181 = memref.load %arg2[%c27] : memref<72xf32, #tpu.memory_space<smem>>
    %182 = vector.extract_strided_slice %4 {offsets = [3, 0, 0], sizes = [1, 8, 128], strides = [1, 1, 1]} : vector<8x8x128xf32> to vector<1x8x128xf32>
    %183 = vector.shape_cast %182 : vector<1x8x128xf32> to vector<8x128xf32>
    %184 = vector.broadcast %181 : f32 to vector<8x128xf32>
    %185 = arith.mulf %184, %183 : vector<8x128xf32>
    %186 = arith.addf %180, %185 : vector<8x128xf32>
    %c28 = arith.constant 28 : index
    %187 = memref.load %arg2[%c28] : memref<72xf32, #tpu.memory_space<smem>>
    %188 = vector.extract_strided_slice %4 {offsets = [4, 0, 0], sizes = [1, 8, 128], strides = [1, 1, 1]} : vector<8x8x128xf32> to vector<1x8x128xf32>
    %189 = vector.shape_cast %188 : vector<1x8x128xf32> to vector<8x128xf32>
    %190 = vector.broadcast %187 : f32 to vector<8x128xf32>
    %191 = arith.mulf %190, %189 : vector<8x128xf32>
    %192 = arith.addf %186, %191 : vector<8x128xf32>
    %c29 = arith.constant 29 : index
    %193 = memref.load %arg2[%c29] : memref<72xf32, #tpu.memory_space<smem>>
    %194 = vector.extract_strided_slice %4 {offsets = [5, 0, 0], sizes = [1, 8, 128], strides = [1, 1, 1]} : vector<8x8x128xf32> to vector<1x8x128xf32>
    %195 = vector.shape_cast %194 : vector<1x8x128xf32> to vector<8x128xf32>
    %196 = vector.broadcast %193 : f32 to vector<8x128xf32>
    %197 = arith.mulf %196, %195 : vector<8x128xf32>
    %198 = arith.addf %192, %197 : vector<8x128xf32>
    %c30 = arith.constant 30 : index
    %199 = memref.load %arg2[%c30] : memref<72xf32, #tpu.memory_space<smem>>
    %200 = vector.extract_strided_slice %4 {offsets = [6, 0, 0], sizes = [1, 8, 128], strides = [1, 1, 1]} : vector<8x8x128xf32> to vector<1x8x128xf32>
    %201 = vector.shape_cast %200 : vector<1x8x128xf32> to vector<8x128xf32>
    %202 = vector.broadcast %199 : f32 to vector<8x128xf32>
    %203 = arith.mulf %202, %201 : vector<8x128xf32>
    %204 = arith.addf %198, %203 : vector<8x128xf32>
    %c31 = arith.constant 31 : index
    %205 = memref.load %arg2[%c31] : memref<72xf32, #tpu.memory_space<smem>>
    %206 = vector.extract_strided_slice %4 {offsets = [7, 0, 0], sizes = [1, 8, 128], strides = [1, 1, 1]} : vector<8x8x128xf32> to vector<1x8x128xf32>
    %207 = vector.shape_cast %206 : vector<1x8x128xf32> to vector<8x128xf32>
    %208 = vector.broadcast %205 : f32 to vector<8x128xf32>
    %209 = arith.mulf %208, %207 : vector<8x128xf32>
    %210 = arith.addf %204, %209 : vector<8x128xf32>
    %c3_7 = arith.constant 3 : index
    %211 = memref.load %arg3[%c3_7] : memref<9xf32, #tpu.memory_space<smem>>
    %212 = math.exp %210 : vector<8x128xf32>
    %213 = vector.broadcast %211 : f32 to vector<8x128xf32>
    %214 = arith.mulf %213, %212 : vector<8x128xf32>
    %c32 = arith.constant 32 : index
    %215 = memref.load %arg2[%c32] : memref<72xf32, #tpu.memory_space<smem>>
    %216 = vector.extract_strided_slice %4 {offsets = [0, 0, 0], sizes = [1, 8, 128], strides = [1, 1, 1]} : vector<8x8x128xf32> to vector<1x8x128xf32>
    %217 = vector.shape_cast %216 : vector<1x8x128xf32> to vector<8x128xf32>
    %218 = vector.broadcast %215 : f32 to vector<8x128xf32>
    %219 = arith.mulf %218, %217 : vector<8x128xf32>
    %c33 = arith.constant 33 : index
    %220 = memref.load %arg2[%c33] : memref<72xf32, #tpu.memory_space<smem>>
    %221 = vector.extract_strided_slice %4 {offsets = [1, 0, 0], sizes = [1, 8, 128], strides = [1, 1, 1]} : vector<8x8x128xf32> to vector<1x8x128xf32>
    %222 = vector.shape_cast %221 : vector<1x8x128xf32> to vector<8x128xf32>
    %223 = vector.broadcast %220 : f32 to vector<8x128xf32>
    %224 = arith.mulf %223, %222 : vector<8x128xf32>
    %225 = arith.addf %219, %224 : vector<8x128xf32>
    %c34 = arith.constant 34 : index
    %226 = memref.load %arg2[%c34] : memref<72xf32, #tpu.memory_space<smem>>
    %227 = vector.extract_strided_slice %4 {offsets = [2, 0, 0], sizes = [1, 8, 128], strides = [1, 1, 1]} : vector<8x8x128xf32> to vector<1x8x128xf32>
    %228 = vector.shape_cast %227 : vector<1x8x128xf32> to vector<8x128xf32>
    %229 = vector.broadcast %226 : f32 to vector<8x128xf32>
    %230 = arith.mulf %229, %228 : vector<8x128xf32>
    %231 = arith.addf %225, %230 : vector<8x128xf32>
    %c35 = arith.constant 35 : index
    %232 = memref.load %arg2[%c35] : memref<72xf32, #tpu.memory_space<smem>>
    %233 = vector.extract_strided_slice %4 {offsets = [3, 0, 0], sizes = [1, 8, 128], strides = [1, 1, 1]} : vector<8x8x128xf32> to vector<1x8x128xf32>
    %234 = vector.shape_cast %233 : vector<1x8x128xf32> to vector<8x128xf32>
    %235 = vector.broadcast %232 : f32 to vector<8x128xf32>
    %236 = arith.mulf %235, %234 : vector<8x128xf32>
    %237 = arith.addf %231, %236 : vector<8x128xf32>
    %c36 = arith.constant 36 : index
    %238 = memref.load %arg2[%c36] : memref<72xf32, #tpu.memory_space<smem>>
    %239 = vector.extract_strided_slice %4 {offsets = [4, 0, 0], sizes = [1, 8, 128], strides = [1, 1, 1]} : vector<8x8x128xf32> to vector<1x8x128xf32>
    %240 = vector.shape_cast %239 : vector<1x8x128xf32> to vector<8x128xf32>
    %241 = vector.broadcast %238 : f32 to vector<8x128xf32>
    %242 = arith.mulf %241, %240 : vector<8x128xf32>
    %243 = arith.addf %237, %242 : vector<8x128xf32>
    %c37 = arith.constant 37 : index
    %244 = memref.load %arg2[%c37] : memref<72xf32, #tpu.memory_space<smem>>
    %245 = vector.extract_strided_slice %4 {offsets = [5, 0, 0], sizes = [1, 8, 128], strides = [1, 1, 1]} : vector<8x8x128xf32> to vector<1x8x128xf32>
    %246 = vector.shape_cast %245 : vector<1x8x128xf32> to vector<8x128xf32>
    %247 = vector.broadcast %244 : f32 to vector<8x128xf32>
    %248 = arith.mulf %247, %246 : vector<8x128xf32>
    %249 = arith.addf %243, %248 : vector<8x128xf32>
    %c38 = arith.constant 38 : index
    %250 = memref.load %arg2[%c38] : memref<72xf32, #tpu.memory_space<smem>>
    %251 = vector.extract_strided_slice %4 {offsets = [6, 0, 0], sizes = [1, 8, 128], strides = [1, 1, 1]} : vector<8x8x128xf32> to vector<1x8x128xf32>
    %252 = vector.shape_cast %251 : vector<1x8x128xf32> to vector<8x128xf32>
    %253 = vector.broadcast %250 : f32 to vector<8x128xf32>
    %254 = arith.mulf %253, %252 : vector<8x128xf32>
    %255 = arith.addf %249, %254 : vector<8x128xf32>
    %c39 = arith.constant 39 : index
    %256 = memref.load %arg2[%c39] : memref<72xf32, #tpu.memory_space<smem>>
    %257 = vector.extract_strided_slice %4 {offsets = [7, 0, 0], sizes = [1, 8, 128], strides = [1, 1, 1]} : vector<8x8x128xf32> to vector<1x8x128xf32>
    %258 = vector.shape_cast %257 : vector<1x8x128xf32> to vector<8x128xf32>
    %259 = vector.broadcast %256 : f32 to vector<8x128xf32>
    %260 = arith.mulf %259, %258 : vector<8x128xf32>
    %261 = arith.addf %255, %260 : vector<8x128xf32>
    %c4_8 = arith.constant 4 : index
    %262 = memref.load %arg3[%c4_8] : memref<9xf32, #tpu.memory_space<smem>>
    %263 = math.exp %261 : vector<8x128xf32>
    %264 = vector.broadcast %262 : f32 to vector<8x128xf32>
    %265 = arith.mulf %264, %263 : vector<8x128xf32>
    %266 = arith.addf %214, %265 : vector<8x128xf32>
    %c40 = arith.constant 40 : index
    %267 = memref.load %arg2[%c40] : memref<72xf32, #tpu.memory_space<smem>>
    %268 = vector.extract_strided_slice %4 {offsets = [0, 0, 0], sizes = [1, 8, 128], strides = [1, 1, 1]} : vector<8x8x128xf32> to vector<1x8x128xf32>
    %269 = vector.shape_cast %268 : vector<1x8x128xf32> to vector<8x128xf32>
    %270 = vector.broadcast %267 : f32 to vector<8x128xf32>
    %271 = arith.mulf %270, %269 : vector<8x128xf32>
    %c41 = arith.constant 41 : index
    %272 = memref.load %arg2[%c41] : memref<72xf32, #tpu.memory_space<smem>>
    %273 = vector.extract_strided_slice %4 {offsets = [1, 0, 0], sizes = [1, 8, 128], strides = [1, 1, 1]} : vector<8x8x128xf32> to vector<1x8x128xf32>
    %274 = vector.shape_cast %273 : vector<1x8x128xf32> to vector<8x128xf32>
    %275 = vector.broadcast %272 : f32 to vector<8x128xf32>
    %276 = arith.mulf %275, %274 : vector<8x128xf32>
    %277 = arith.addf %271, %276 : vector<8x128xf32>
    %c42 = arith.constant 42 : index
    %278 = memref.load %arg2[%c42] : memref<72xf32, #tpu.memory_space<smem>>
    %279 = vector.extract_strided_slice %4 {offsets = [2, 0, 0], sizes = [1, 8, 128], strides = [1, 1, 1]} : vector<8x8x128xf32> to vector<1x8x128xf32>
    %280 = vector.shape_cast %279 : vector<1x8x128xf32> to vector<8x128xf32>
    %281 = vector.broadcast %278 : f32 to vector<8x128xf32>
    %282 = arith.mulf %281, %280 : vector<8x128xf32>
    %283 = arith.addf %277, %282 : vector<8x128xf32>
    %c43 = arith.constant 43 : index
    %284 = memref.load %arg2[%c43] : memref<72xf32, #tpu.memory_space<smem>>
    %285 = vector.extract_strided_slice %4 {offsets = [3, 0, 0], sizes = [1, 8, 128], strides = [1, 1, 1]} : vector<8x8x128xf32> to vector<1x8x128xf32>
    %286 = vector.shape_cast %285 : vector<1x8x128xf32> to vector<8x128xf32>
    %287 = vector.broadcast %284 : f32 to vector<8x128xf32>
    %288 = arith.mulf %287, %286 : vector<8x128xf32>
    %289 = arith.addf %283, %288 : vector<8x128xf32>
    %c44 = arith.constant 44 : index
    %290 = memref.load %arg2[%c44] : memref<72xf32, #tpu.memory_space<smem>>
    %291 = vector.extract_strided_slice %4 {offsets = [4, 0, 0], sizes = [1, 8, 128], strides = [1, 1, 1]} : vector<8x8x128xf32> to vector<1x8x128xf32>
    %292 = vector.shape_cast %291 : vector<1x8x128xf32> to vector<8x128xf32>
    %293 = vector.broadcast %290 : f32 to vector<8x128xf32>
    %294 = arith.mulf %293, %292 : vector<8x128xf32>
    %295 = arith.addf %289, %294 : vector<8x128xf32>
    %c45 = arith.constant 45 : index
    %296 = memref.load %arg2[%c45] : memref<72xf32, #tpu.memory_space<smem>>
    %297 = vector.extract_strided_slice %4 {offsets = [5, 0, 0], sizes = [1, 8, 128], strides = [1, 1, 1]} : vector<8x8x128xf32> to vector<1x8x128xf32>
    %298 = vector.shape_cast %297 : vector<1x8x128xf32> to vector<8x128xf32>
    %299 = vector.broadcast %296 : f32 to vector<8x128xf32>
    %300 = arith.mulf %299, %298 : vector<8x128xf32>
    %301 = arith.addf %295, %300 : vector<8x128xf32>
    %c46 = arith.constant 46 : index
    %302 = memref.load %arg2[%c46] : memref<72xf32, #tpu.memory_space<smem>>
    %303 = vector.extract_strided_slice %4 {offsets = [6, 0, 0], sizes = [1, 8, 128], strides = [1, 1, 1]} : vector<8x8x128xf32> to vector<1x8x128xf32>
    %304 = vector.shape_cast %303 : vector<1x8x128xf32> to vector<8x128xf32>
    %305 = vector.broadcast %302 : f32 to vector<8x128xf32>
    %306 = arith.mulf %305, %304 : vector<8x128xf32>
    %307 = arith.addf %301, %306 : vector<8x128xf32>
    %c47 = arith.constant 47 : index
    %308 = memref.load %arg2[%c47] : memref<72xf32, #tpu.memory_space<smem>>
    %309 = vector.extract_strided_slice %4 {offsets = [7, 0, 0], sizes = [1, 8, 128], strides = [1, 1, 1]} : vector<8x8x128xf32> to vector<1x8x128xf32>
    %310 = vector.shape_cast %309 : vector<1x8x128xf32> to vector<8x128xf32>
    %311 = vector.broadcast %308 : f32 to vector<8x128xf32>
    %312 = arith.mulf %311, %310 : vector<8x128xf32>
    %313 = arith.addf %307, %312 : vector<8x128xf32>
    %c5_9 = arith.constant 5 : index
    %314 = memref.load %arg3[%c5_9] : memref<9xf32, #tpu.memory_space<smem>>
    %315 = math.exp %313 : vector<8x128xf32>
    %316 = vector.broadcast %314 : f32 to vector<8x128xf32>
    %317 = arith.mulf %316, %315 : vector<8x128xf32>
    %318 = arith.addf %266, %317 : vector<8x128xf32>
    %319 = math.sin %318 : vector<8x128xf32>
    %320 = math.absf %319 : vector<8x128xf32>
    %cst_10 = arith.constant 9.99999997E-7 : f32
    %321 = vector.broadcast %cst_10 : f32 to vector<8x128xf32>
    %322 = arith.addf %320, %321 : vector<8x128xf32>
    %323 = math.log %322 : vector<8x128xf32>
    %c48 = arith.constant 48 : index
    %324 = memref.load %arg2[%c48] : memref<72xf32, #tpu.memory_space<smem>>
    %325 = vector.extract_strided_slice %4 {offsets = [0, 0, 0], sizes = [1, 8, 128], strides = [1, 1, 1]} : vector<8x8x128xf32> to vector<1x8x128xf32>
    %326 = vector.shape_cast %325 : vector<1x8x128xf32> to vector<8x128xf32>
    %327 = vector.broadcast %324 : f32 to vector<8x128xf32>
    %328 = arith.mulf %327, %326 : vector<8x128xf32>
    %c49 = arith.constant 49 : index
    %329 = memref.load %arg2[%c49] : memref<72xf32, #tpu.memory_space<smem>>
    %330 = vector.extract_strided_slice %4 {offsets = [1, 0, 0], sizes = [1, 8, 128], strides = [1, 1, 1]} : vector<8x8x128xf32> to vector<1x8x128xf32>
    %331 = vector.shape_cast %330 : vector<1x8x128xf32> to vector<8x128xf32>
    %332 = vector.broadcast %329 : f32 to vector<8x128xf32>
    %333 = arith.mulf %332, %331 : vector<8x128xf32>
    %334 = arith.addf %328, %333 : vector<8x128xf32>
    %c50 = arith.constant 50 : index
    %335 = memref.load %arg2[%c50] : memref<72xf32, #tpu.memory_space<smem>>
    %336 = vector.extract_strided_slice %4 {offsets = [2, 0, 0], sizes = [1, 8, 128], strides = [1, 1, 1]} : vector<8x8x128xf32> to vector<1x8x128xf32>
    %337 = vector.shape_cast %336 : vector<1x8x128xf32> to vector<8x128xf32>
    %338 = vector.broadcast %335 : f32 to vector<8x128xf32>
    %339 = arith.mulf %338, %337 : vector<8x128xf32>
    %340 = arith.addf %334, %339 : vector<8x128xf32>
    %c51 = arith.constant 51 : index
    %341 = memref.load %arg2[%c51] : memref<72xf32, #tpu.memory_space<smem>>
    %342 = vector.extract_strided_slice %4 {offsets = [3, 0, 0], sizes = [1, 8, 128], strides = [1, 1, 1]} : vector<8x8x128xf32> to vector<1x8x128xf32>
    %343 = vector.shape_cast %342 : vector<1x8x128xf32> to vector<8x128xf32>
    %344 = vector.broadcast %341 : f32 to vector<8x128xf32>
    %345 = arith.mulf %344, %343 : vector<8x128xf32>
    %346 = arith.addf %340, %345 : vector<8x128xf32>
    %c52 = arith.constant 52 : index
    %347 = memref.load %arg2[%c52] : memref<72xf32, #tpu.memory_space<smem>>
    %348 = vector.extract_strided_slice %4 {offsets = [4, 0, 0], sizes = [1, 8, 128], strides = [1, 1, 1]} : vector<8x8x128xf32> to vector<1x8x128xf32>
    %349 = vector.shape_cast %348 : vector<1x8x128xf32> to vector<8x128xf32>
    %350 = vector.broadcast %347 : f32 to vector<8x128xf32>
    %351 = arith.mulf %350, %349 : vector<8x128xf32>
    %352 = arith.addf %346, %351 : vector<8x128xf32>
    %c53 = arith.constant 53 : index
    %353 = memref.load %arg2[%c53] : memref<72xf32, #tpu.memory_space<smem>>
    %354 = vector.extract_strided_slice %4 {offsets = [5, 0, 0], sizes = [1, 8, 128], strides = [1, 1, 1]} : vector<8x8x128xf32> to vector<1x8x128xf32>
    %355 = vector.shape_cast %354 : vector<1x8x128xf32> to vector<8x128xf32>
    %356 = vector.broadcast %353 : f32 to vector<8x128xf32>
    %357 = arith.mulf %356, %355 : vector<8x128xf32>
    %358 = arith.addf %352, %357 : vector<8x128xf32>
    %c54 = arith.constant 54 : index
    %359 = memref.load %arg2[%c54] : memref<72xf32, #tpu.memory_space<smem>>
    %360 = vector.extract_strided_slice %4 {offsets = [6, 0, 0], sizes = [1, 8, 128], strides = [1, 1, 1]} : vector<8x8x128xf32> to vector<1x8x128xf32>
    %361 = vector.shape_cast %360 : vector<1x8x128xf32> to vector<8x128xf32>
    %362 = vector.broadcast %359 : f32 to vector<8x128xf32>
    %363 = arith.mulf %362, %361 : vector<8x128xf32>
    %364 = arith.addf %358, %363 : vector<8x128xf32>
    %c55 = arith.constant 55 : index
    %365 = memref.load %arg2[%c55] : memref<72xf32, #tpu.memory_space<smem>>
    %366 = vector.extract_strided_slice %4 {offsets = [7, 0, 0], sizes = [1, 8, 128], strides = [1, 1, 1]} : vector<8x8x128xf32> to vector<1x8x128xf32>
    %367 = vector.shape_cast %366 : vector<1x8x128xf32> to vector<8x128xf32>
    %368 = vector.broadcast %365 : f32 to vector<8x128xf32>
    %369 = arith.mulf %368, %367 : vector<8x128xf32>
    %370 = arith.addf %364, %369 : vector<8x128xf32>
    %c6_11 = arith.constant 6 : index
    %371 = memref.load %arg3[%c6_11] : memref<9xf32, #tpu.memory_space<smem>>
    %372 = math.exp %370 : vector<8x128xf32>
    %373 = vector.broadcast %371 : f32 to vector<8x128xf32>
    %374 = arith.mulf %373, %372 : vector<8x128xf32>
    %c56 = arith.constant 56 : index
    %375 = memref.load %arg2[%c56] : memref<72xf32, #tpu.memory_space<smem>>
    %376 = vector.extract_strided_slice %4 {offsets = [0, 0, 0], sizes = [1, 8, 128], strides = [1, 1, 1]} : vector<8x8x128xf32> to vector<1x8x128xf32>
    %377 = vector.shape_cast %376 : vector<1x8x128xf32> to vector<8x128xf32>
    %378 = vector.broadcast %375 : f32 to vector<8x128xf32>
    %379 = arith.mulf %378, %377 : vector<8x128xf32>
    %c57 = arith.constant 57 : index
    %380 = memref.load %arg2[%c57] : memref<72xf32, #tpu.memory_space<smem>>
    %381 = vector.extract_strided_slice %4 {offsets = [1, 0, 0], sizes = [1, 8, 128], strides = [1, 1, 1]} : vector<8x8x128xf32> to vector<1x8x128xf32>
    %382 = vector.shape_cast %381 : vector<1x8x128xf32> to vector<8x128xf32>
    %383 = vector.broadcast %380 : f32 to vector<8x128xf32>
    %384 = arith.mulf %383, %382 : vector<8x128xf32>
    %385 = arith.addf %379, %384 : vector<8x128xf32>
    %c58 = arith.constant 58 : index
    %386 = memref.load %arg2[%c58] : memref<72xf32, #tpu.memory_space<smem>>
    %387 = vector.extract_strided_slice %4 {offsets = [2, 0, 0], sizes = [1, 8, 128], strides = [1, 1, 1]} : vector<8x8x128xf32> to vector<1x8x128xf32>
    %388 = vector.shape_cast %387 : vector<1x8x128xf32> to vector<8x128xf32>
    %389 = vector.broadcast %386 : f32 to vector<8x128xf32>
    %390 = arith.mulf %389, %388 : vector<8x128xf32>
    %391 = arith.addf %385, %390 : vector<8x128xf32>
    %c59 = arith.constant 59 : index
    %392 = memref.load %arg2[%c59] : memref<72xf32, #tpu.memory_space<smem>>
    %393 = vector.extract_strided_slice %4 {offsets = [3, 0, 0], sizes = [1, 8, 128], strides = [1, 1, 1]} : vector<8x8x128xf32> to vector<1x8x128xf32>
    %394 = vector.shape_cast %393 : vector<1x8x128xf32> to vector<8x128xf32>
    %395 = vector.broadcast %392 : f32 to vector<8x128xf32>
    %396 = arith.mulf %395, %394 : vector<8x128xf32>
    %397 = arith.addf %391, %396 : vector<8x128xf32>
    %c60 = arith.constant 60 : index
    %398 = memref.load %arg2[%c60] : memref<72xf32, #tpu.memory_space<smem>>
    %399 = vector.extract_strided_slice %4 {offsets = [4, 0, 0], sizes = [1, 8, 128], strides = [1, 1, 1]} : vector<8x8x128xf32> to vector<1x8x128xf32>
    %400 = vector.shape_cast %399 : vector<1x8x128xf32> to vector<8x128xf32>
    %401 = vector.broadcast %398 : f32 to vector<8x128xf32>
    %402 = arith.mulf %401, %400 : vector<8x128xf32>
    %403 = arith.addf %397, %402 : vector<8x128xf32>
    %c61 = arith.constant 61 : index
    %404 = memref.load %arg2[%c61] : memref<72xf32, #tpu.memory_space<smem>>
    %405 = vector.extract_strided_slice %4 {offsets = [5, 0, 0], sizes = [1, 8, 128], strides = [1, 1, 1]} : vector<8x8x128xf32> to vector<1x8x128xf32>
    %406 = vector.shape_cast %405 : vector<1x8x128xf32> to vector<8x128xf32>
    %407 = vector.broadcast %404 : f32 to vector<8x128xf32>
    %408 = arith.mulf %407, %406 : vector<8x128xf32>
    %409 = arith.addf %403, %408 : vector<8x128xf32>
    %c62 = arith.constant 62 : index
    %410 = memref.load %arg2[%c62] : memref<72xf32, #tpu.memory_space<smem>>
    %411 = vector.extract_strided_slice %4 {offsets = [6, 0, 0], sizes = [1, 8, 128], strides = [1, 1, 1]} : vector<8x8x128xf32> to vector<1x8x128xf32>
    %412 = vector.shape_cast %411 : vector<1x8x128xf32> to vector<8x128xf32>
    %413 = vector.broadcast %410 : f32 to vector<8x128xf32>
    %414 = arith.mulf %413, %412 : vector<8x128xf32>
    %415 = arith.addf %409, %414 : vector<8x128xf32>
    %c63 = arith.constant 63 : index
    %416 = memref.load %arg2[%c63] : memref<72xf32, #tpu.memory_space<smem>>
    %417 = vector.extract_strided_slice %4 {offsets = [7, 0, 0], sizes = [1, 8, 128], strides = [1, 1, 1]} : vector<8x8x128xf32> to vector<1x8x128xf32>
    %418 = vector.shape_cast %417 : vector<1x8x128xf32> to vector<8x128xf32>
    %419 = vector.broadcast %416 : f32 to vector<8x128xf32>
    %420 = arith.mulf %419, %418 : vector<8x128xf32>
    %421 = arith.addf %415, %420 : vector<8x128xf32>
    %c7_12 = arith.constant 7 : index
    %422 = memref.load %arg3[%c7_12] : memref<9xf32, #tpu.memory_space<smem>>
    %423 = math.exp %421 : vector<8x128xf32>
    %424 = vector.broadcast %422 : f32 to vector<8x128xf32>
    %425 = arith.mulf %424, %423 : vector<8x128xf32>
    %426 = arith.addf %374, %425 : vector<8x128xf32>
    %c64 = arith.constant 64 : index
    %427 = memref.load %arg2[%c64] : memref<72xf32, #tpu.memory_space<smem>>
    %428 = vector.extract_strided_slice %4 {offsets = [0, 0, 0], sizes = [1, 8, 128], strides = [1, 1, 1]} : vector<8x8x128xf32> to vector<1x8x128xf32>
    %429 = vector.shape_cast %428 : vector<1x8x128xf32> to vector<8x128xf32>
    %430 = vector.broadcast %427 : f32 to vector<8x128xf32>
    %431 = arith.mulf %430, %429 : vector<8x128xf32>
    %c65 = arith.constant 65 : index
    %432 = memref.load %arg2[%c65] : memref<72xf32, #tpu.memory_space<smem>>
    %433 = vector.extract_strided_slice %4 {offsets = [1, 0, 0], sizes = [1, 8, 128], strides = [1, 1, 1]} : vector<8x8x128xf32> to vector<1x8x128xf32>
    %434 = vector.shape_cast %433 : vector<1x8x128xf32> to vector<8x128xf32>
    %435 = vector.broadcast %432 : f32 to vector<8x128xf32>
    %436 = arith.mulf %435, %434 : vector<8x128xf32>
    %437 = arith.addf %431, %436 : vector<8x128xf32>
    %c66 = arith.constant 66 : index
    %438 = memref.load %arg2[%c66] : memref<72xf32, #tpu.memory_space<smem>>
    %439 = vector.extract_strided_slice %4 {offsets = [2, 0, 0], sizes = [1, 8, 128], strides = [1, 1, 1]} : vector<8x8x128xf32> to vector<1x8x128xf32>
    %440 = vector.shape_cast %439 : vector<1x8x128xf32> to vector<8x128xf32>
    %441 = vector.broadcast %438 : f32 to vector<8x128xf32>
    %442 = arith.mulf %441, %440 : vector<8x128xf32>
    %443 = arith.addf %437, %442 : vector<8x128xf32>
    %c67 = arith.constant 67 : index
    %444 = memref.load %arg2[%c67] : memref<72xf32, #tpu.memory_space<smem>>
    %445 = vector.extract_strided_slice %4 {offsets = [3, 0, 0], sizes = [1, 8, 128], strides = [1, 1, 1]} : vector<8x8x128xf32> to vector<1x8x128xf32>
    %446 = vector.shape_cast %445 : vector<1x8x128xf32> to vector<8x128xf32>
    %447 = vector.broadcast %444 : f32 to vector<8x128xf32>
    %448 = arith.mulf %447, %446 : vector<8x128xf32>
    %449 = arith.addf %443, %448 : vector<8x128xf32>
    %c68 = arith.constant 68 : index
    %450 = memref.load %arg2[%c68] : memref<72xf32, #tpu.memory_space<smem>>
    %451 = vector.extract_strided_slice %4 {offsets = [4, 0, 0], sizes = [1, 8, 128], strides = [1, 1, 1]} : vector<8x8x128xf32> to vector<1x8x128xf32>
    %452 = vector.shape_cast %451 : vector<1x8x128xf32> to vector<8x128xf32>
    %453 = vector.broadcast %450 : f32 to vector<8x128xf32>
    %454 = arith.mulf %453, %452 : vector<8x128xf32>
    %455 = arith.addf %449, %454 : vector<8x128xf32>
    %c69 = arith.constant 69 : index
    %456 = memref.load %arg2[%c69] : memref<72xf32, #tpu.memory_space<smem>>
    %457 = vector.extract_strided_slice %4 {offsets = [5, 0, 0], sizes = [1, 8, 128], strides = [1, 1, 1]} : vector<8x8x128xf32> to vector<1x8x128xf32>
    %458 = vector.shape_cast %457 : vector<1x8x128xf32> to vector<8x128xf32>
    %459 = vector.broadcast %456 : f32 to vector<8x128xf32>
    %460 = arith.mulf %459, %458 : vector<8x128xf32>
    %461 = arith.addf %455, %460 : vector<8x128xf32>
    %c70 = arith.constant 70 : index
    %462 = memref.load %arg2[%c70] : memref<72xf32, #tpu.memory_space<smem>>
    %463 = vector.extract_strided_slice %4 {offsets = [6, 0, 0], sizes = [1, 8, 128], strides = [1, 1, 1]} : vector<8x8x128xf32> to vector<1x8x128xf32>
    %464 = vector.shape_cast %463 : vector<1x8x128xf32> to vector<8x128xf32>
    %465 = vector.broadcast %462 : f32 to vector<8x128xf32>
    %466 = arith.mulf %465, %464 : vector<8x128xf32>
    %467 = arith.addf %461, %466 : vector<8x128xf32>
    %c71 = arith.constant 71 : index
    %468 = memref.load %arg2[%c71] : memref<72xf32, #tpu.memory_space<smem>>
    %469 = vector.extract_strided_slice %4 {offsets = [7, 0, 0], sizes = [1, 8, 128], strides = [1, 1, 1]} : vector<8x8x128xf32> to vector<1x8x128xf32>
    %470 = vector.shape_cast %469 : vector<1x8x128xf32> to vector<8x128xf32>
    %471 = vector.broadcast %468 : f32 to vector<8x128xf32>
    %472 = arith.mulf %471, %470 : vector<8x128xf32>
    %473 = arith.addf %467, %472 : vector<8x128xf32>
    %c8_13 = arith.constant 8 : index
    %474 = memref.load %arg3[%c8_13] : memref<9xf32, #tpu.memory_space<smem>>
    %475 = math.exp %473 : vector<8x128xf32>
    %476 = vector.broadcast %474 : f32 to vector<8x128xf32>
    %477 = arith.mulf %476, %475 : vector<8x128xf32>
    %478 = arith.addf %426, %477 : vector<8x128xf32>
    %479 = math.tanh %478 : vector<8x128xf32>
    %480 = math.absf %479 : vector<8x128xf32>
    %cst_14 = arith.constant 9.99999997E-7 : f32
    %481 = vector.broadcast %cst_14 : f32 to vector<8x128xf32>
    %482 = arith.addf %480, %481 : vector<8x128xf32>
    %483 = math.log %482 : vector<8x128xf32>
    %c0_15 = arith.constant 0 : index
    %484 = memref.load %arg4[%c0_15] : memref<9xf32, #tpu.memory_space<smem>>
    %485 = vector.broadcast %484 : f32 to vector<8x128xf32>
    %486 = arith.mulf %485, %163 : vector<8x128xf32>
    %c1_16 = arith.constant 1 : index
    %487 = memref.load %arg4[%c1_16] : memref<9xf32, #tpu.memory_space<smem>>
    %488 = vector.broadcast %487 : f32 to vector<8x128xf32>
    %489 = arith.mulf %488, %323 : vector<8x128xf32>
    %490 = arith.addf %486, %489 : vector<8x128xf32>
    %c2_17 = arith.constant 2 : index
    %491 = memref.load %arg4[%c2_17] : memref<9xf32, #tpu.memory_space<smem>>
    %492 = vector.broadcast %491 : f32 to vector<8x128xf32>
    %493 = arith.mulf %492, %483 : vector<8x128xf32>
    %494 = arith.addf %490, %493 : vector<8x128xf32>
    %c0_18 = arith.constant 0 : index
    %495 = memref.load %arg5[%c0_18] : memref<3xf32, #tpu.memory_space<smem>>
    %496 = math.exp %494 : vector<8x128xf32>
    %497 = vector.broadcast %495 : f32 to vector<8x128xf32>
    %498 = arith.mulf %497, %496 : vector<8x128xf32>
    %c3_19 = arith.constant 3 : index
    %499 = memref.load %arg4[%c3_19] : memref<9xf32, #tpu.memory_space<smem>>
    %500 = vector.broadcast %499 : f32 to vector<8x128xf32>
    %501 = arith.mulf %500, %163 : vector<8x128xf32>
    %c4_20 = arith.constant 4 : index
    %502 = memref.load %arg4[%c4_20] : memref<9xf32, #tpu.memory_space<smem>>
    %503 = vector.broadcast %502 : f32 to vector<8x128xf32>
    %504 = arith.mulf %503, %323 : vector<8x128xf32>
    %505 = arith.addf %501, %504 : vector<8x128xf32>
    %c5_21 = arith.constant 5 : index
    %506 = memref.load %arg4[%c5_21] : memref<9xf32, #tpu.memory_space<smem>>
    %507 = vector.broadcast %506 : f32 to vector<8x128xf32>
    %508 = arith.mulf %507, %483 : vector<8x128xf32>
    %509 = arith.addf %505, %508 : vector<8x128xf32>
    %c1_22 = arith.constant 1 : index
    %510 = memref.load %arg5[%c1_22] : memref<3xf32, #tpu.memory_space<smem>>
    %511 = math.exp %509 : vector<8x128xf32>
    %512 = vector.broadcast %510 : f32 to vector<8x128xf32>
    %513 = arith.mulf %512, %511 : vector<8x128xf32>
    %514 = arith.addf %498, %513 : vector<8x128xf32>
    %c6_23 = arith.constant 6 : index
    %515 = memref.load %arg4[%c6_23] : memref<9xf32, #tpu.memory_space<smem>>
    %516 = vector.broadcast %515 : f32 to vector<8x128xf32>
    %517 = arith.mulf %516, %163 : vector<8x128xf32>
    %c7_24 = arith.constant 7 : index
    %518 = memref.load %arg4[%c7_24] : memref<9xf32, #tpu.memory_space<smem>>
    %519 = vector.broadcast %518 : f32 to vector<8x128xf32>
    %520 = arith.mulf %519, %323 : vector<8x128xf32>
    %521 = arith.addf %517, %520 : vector<8x128xf32>
    %c8_25 = arith.constant 8 : index
    %522 = memref.load %arg4[%c8_25] : memref<9xf32, #tpu.memory_space<smem>>
    %523 = vector.broadcast %522 : f32 to vector<8x128xf32>
    %524 = arith.mulf %523, %483 : vector<8x128xf32>
    %525 = arith.addf %521, %524 : vector<8x128xf32>
    %c2_26 = arith.constant 2 : index
    %526 = memref.load %arg5[%c2_26] : memref<3xf32, #tpu.memory_space<smem>>
    %527 = math.exp %525 : vector<8x128xf32>
    %528 = vector.broadcast %526 : f32 to vector<8x128xf32>
    %529 = arith.mulf %528, %527 : vector<8x128xf32>
    %530 = arith.addf %514, %529 : vector<8x128xf32>
    %c0_27 = arith.constant 0 : index
    %c0_28 = arith.constant 0 : index
    %531 = vector.load %arg6[%c0_27, %c0_28] : memref<8x128xf32, #tpu.memory_space<vmem>>, vector<8x128xf32>
    tpu.vector_store %arg6[%c0_27, %c0_28], %530 {strides = array<i32>} : memref<8x128xf32, #tpu.memory_space<vmem>>, vector<8x128xf32>,
    return
  }
  func.func @transform_0(%arg0: i32) -> (i32, i32, i32) {
    %c0_i32 = arith.constant 0 : i32
    %c0_i32_0 = arith.constant 0 : i32
    %c0_i32_1 = arith.constant 0 : i32
    return %c0_i32, %arg0, %c0_i32_0 : i32, i32, i32
  }
  func.func @transform_1(%arg0: i32) -> i32 {
    %c0_i32 = arith.constant 0 : i32
    %c0_i32_0 = arith.constant 0 : i32
    return %c0_i32 : i32
  }
  func.func @transform_2(%arg0: i32) -> i32 {
    %c0_i32 = arith.constant 0 : i32
    %c0_i32_0 = arith.constant 0 : i32
    return %c0_i32 : i32
  }
  func.func @transform_3(%arg0: i32) -> i32 {
    %c0_i32 = arith.constant 0 : i32
    %c0_i32_0 = arith.constant 0 : i32
    return %c0_i32 : i32
  }
  func.func @transform_4(%arg0: i32) -> i32 {
    %c0_i32 = arith.constant 0 : i32
    %c0_i32_0 = arith.constant 0 : i32
    return %c0_i32 : i32
  }
  func.func @transform_5(%arg0: i32) -> (i32, i32) {
    %c0_i32 = arith.constant 0 : i32
    %c0_i32_0 = arith.constant 0 : i32
    return %arg0, %c0_i32 : i32, i32
  }
}

</mosaic_0001>

<bundles_post_ra>
// kernel: tpu_custom_call.1
= control target key start
LH: loop header
LB: loop body
LE: loop exit
PB: predicated region body
PF: predicated region fallthrough
CT: control target
= control target key end

     0   :  { %s2026_s0 = inlined_call_operand.hbm [shape: f32[8,16,128], index: 0, kind: input, shape index: {}]   ;;  %s2027_s1 = inlined_call_operand.vmem [shape: f32[72], index: 1, kind: input, shape index: {}]   ;;  %s2028_s2 = inlined_call_operand.vmem [shape: f32[9], index: 2, kind: input, shape index: {}]   ;;  %s2029_s3 = inlined_call_operand.vmem [shape: f32[9], index: 3, kind: input, shape index: {}]   ;;  %s2030_s4 = inlined_call_operand.vmem [shape: f32[3], index: 4, kind: input, shape index: {}]   ;;  %s2031_s5 = inlined_call_operand.hbm [shape: f32[16,128], index: 5, kind: output, shape index: {}]  }
   0x1   :  { %2035 = sst [smem:[#allocation18_spill]] %s2026_s0 }
   0x2   :  { %2036 = sst [smem:[#allocation19_spill]] %s2027_s1 }
   0x3   :  { %10 = vsyncpa [#allocation3], 0 }
   0x4   :  { %12 = vsyncpa [#allocation3 + $0x1], 0 }
   0x5   :  { %13 = vsyncpa [#allocation5], 0 }
   0x6   :  { %14 = vsyncpa [#allocation8], 0 }
   0x7   :  { %15 = vsyncpa [#allocation11], 0 }
   0x8   :  { %16 = vsyncpa [#allocation4], 0 }
   0x9   :  { %18 = vsyncpa [#allocation4 + $0x1], 0  ;;  %s1437_s18 = smov 0   ;;  %s1439_s19 = smov 0  }
   0xa   :  { %s1441_s20 = smov 0   ;;  %s1443_s21 = smov 0  }
   0xb LB: > { %s1458_s22 = sadd.s32 4294967295, %s1390_s21   ;;  %s957_s23 = sadd.s32 4294967294, %s1390_s21   ;;  %s1390_s21 = sphi %s1443_s21, %s2059_s21   ;;  %s1386_s20 = sphi %s1441_s20, %s2058_s20   ;;  %s1382_s19 = sphi %s1439_s19, %s2057_s19   ;;  %s1378_s18 = sphi %s1437_s18, %s2056_s18  }
   0xc   : > { %p44_p0 = scmp.ne.s32.totalorder %s1382_s19, %s1378_s18  ;;  %p2032_p1 = scmp.eq.s32.totalorder %s1458_s22, 0 }
   0xd   : > { %p158_p3 = scmp.eq.s32.totalorder %s957_s23, 1  ;;  %p958_p5 = scmp.ge.s32.totalorder %s1390_s21, 1 }
   0xe   : > { %p1467_p4 = por %p2032_p1, %p44_p0  ;;  %p165_p7 = scmp.lt.s32.totalorder %s1390_s21, 3 }
   0xf   : > { %p1472_p6 = por %p158_p3, %p44_p0  ;;  %s189_s28 = sshll.u32 %s2028_s2, 4  ;;  %s190_s28 = int_to_ptr.vmem [resolvable:$true] %s189_s28 }
  0x10   : > { %s2037_s24 = scalar_select %p1467_p4, 1, 0 }
  0x11   : > { %s2038_s25 = scalar_select %p1472_p6, 1, 0 }
  0x12   : > { %p1480_p8 = pnand %p958_p5, %p165_p7  ;;  %s2040_s1 = sld [smem:[#allocation19_spill]] }
  0x13   : > { %s200_s11 = sshll.u32 %s2029_s3, 4  ;;  %s211_s14 = sshll.u32 %s2030_s4, 4  ;;  %s1499_s11 = int_to_ptr.vmem [resolvable:$true] %s200_s11  ;;  %s212_s14 = int_to_ptr.vmem [resolvable:$true] %s211_s14 }
  0x14   : > { %s2039_s29 = scalar_select %p1480_p8, 1, 0 }
  0x15   : > { %p1094_p10 = pneg %p1480_p8  ;;  %s1222_s15 = scalar_lea.vmem %s190_s28, 16 }
  0x16   : > { %p1223_p12 = scmp.ne.s32.totalorder %s190_s28, %s1222_s15  ;;  %p1230_p5 = scmp.lt.s32.totalorder %s190_s28, %s190_s28 }
  0x17   : > { %p1492_p11 = pnand %p1094_p10, %p2032_p1  ;;  %p1231_p7 = scmp.lt.s32.totalorder %s1222_s15, %s1222_s15 }
  0x18   : > { %s178_s7 = sshll.u32 %s2040_s1, 4  ;;  %s179_s7 = int_to_ptr.vmem [resolvable:$true] %s178_s7 }
  0x19   : > { %p1224_p13 = pneg %p1492_p11  ;;  %p1232_p10 = por %p1231_p7, %p1230_p5 }
  0x1b   : > { %p1225_p0 = pnand %p1224_p13, %p1223_p12 }
  0x1d   : > { %p1226_p3 = pneg %p1225_p0 }
  0x1f   : > { %p1233_p9 = pnand %p1232_p10, %p1226_p3 }
  0x21   : > { %1236 = shalt.err (!%p1233_p9)
}
  0x22   : > { %s1392_s16 = smov [#allocation7]   ;;  %s1237_s17 = scalar_lea.vmem %s179_s7, 16 }
  0x23   : > { %1100 = dma.vmem_to_smem (!%p1492_p11), %s190_s28, 16, %s1392_s16, [#allocation8]  }
  0x24   : > { %p1238_p1 = scmp.ne.s32.totalorder %s179_s7, %s1237_s17  ;;  %p1245_p4 = scmp.lt.s32.totalorder %s179_s7, %s179_s7 }
  0x25   : > { %p1246_p8 = scmp.lt.s32.totalorder %s1237_s17, %s1237_s17 }
  0x26   : > { %p1240_p2 = pnand %p1238_p1, %p1224_p13 }
  0x27   : > { %p1247_p12 = por %p1246_p8, %p1245_p4 }
  0x28   : > { %p1241_p6 = pneg %p1240_p2 }
  0x2a   : > { %p1248_p0 = pnand %p1247_p12, %p1241_p6 }
  0x2c   : > { %1251 = shalt.err (!%p1248_p0)
}
  0x2d   : > { %s1393_s23 = smov [#allocation6]   ;;  %s1252_s26 = scalar_lea.vmem %s1499_s11, 16 }
  0x2e   : > { %1097 = dma.vmem_to_smem (!%p1492_p11), %s179_s7, 16, %s1393_s23, [#allocation5]  }
  0x2f   : > { %p1253_p9 = scmp.ne.s32.totalorder %s1499_s11, %s1252_s26  ;;  %p1260_p2 = scmp.lt.s32.totalorder %s1499_s11, %s1499_s11 }
  0x30   : > { %p1261_p5 = scmp.lt.s32.totalorder %s1252_s26, %s1252_s26 }
  0x31   : > { %p1255_p3 = pnand %p1253_p9, %p1224_p13 }
  0x32   : > { %p1262_p4 = por %p1261_p5, %p1260_p2 }
  0x33   : > { %p1256_p1 = pneg %p1255_p3 }
  0x35   : > { %p1263_p6 = pnand %p1262_p4, %p1256_p1 }
  0x37   : > { %1266 = shalt.err (!%p1263_p6)
}
  0x38   : > { %s1394_s27 = smov [#allocation9]   ;;  %s1267_s6 = scalar_lea.vmem %s212_s14, 16 }
  0x39   : > { %1103 = dma.vmem_to_smem (!%p1492_p11), %s1499_s11, 16, %s1394_s27, [#allocation8]  }
  0x3a   : > { %p1268_p8 = scmp.ne.s32.totalorder %s212_s14, %s1267_s6  ;;  %p1275_p12 = scmp.lt.s32.totalorder %s212_s14, %s212_s14 }
  0x3b   : > { %p1276_p0 = scmp.lt.s32.totalorder %s1267_s6, %s1267_s6 }
  0x3c   : > { %p1270_p7 = pnand %p1268_p8, %p1224_p13 }
  0x3d   : > { %p1277_p9 = por %p1276_p0, %p1275_p12 }
  0x3e   : > { %p1271_p10 = pneg %p1270_p7 }
  0x40   : > { %p1278_p3 = pnand %p1277_p9, %p1271_p10 }
  0x42   : > { %1281 = shalt.err (!%p1278_p3)
}
  0x43   : > { %s1395_s7 = smov [#allocation10]   ;;  %s1536_s9 = sadd.s32 1, %s1390_s21  }
  0x44   : > { %1106 = dma.vmem_to_smem (!%p1492_p11), %s212_s14, 16, %s1395_s7, [#allocation11]  }
  0x45   : > { %s28_s10 = ssub.s32 %s1390_s21, %s1536_s9  ;;  %s31_s11 = sadd.s32 1, %s1386_s20 }
  0x46   : > { %p29_p13 = scmp.eq.s32.totalorder %s28_s10, 0  ;;  %p38_p1 = scmp.ne.s32.totalorder %s1386_s20, %s1382_s19 }
  0x47   : > { %p39_p2 = scmp.eq.s32.totalorder %s1390_s21, 0  ;;  %p2042_p4 = scmp.eq.s32.totalorder %s1458_s22, 1 }
  0x48   : > { %s1545_s8 = scalar_select %p29_p13, %s1386_s20, %s31_s11  }
  0x49   : > { %p40_p5 = por %p39_p2, %p38_p1  ;;  %p1549_p6 = por %p2042_p4, %p38_p1 }
  0x4a   : > { %p1119_p8 = scmp.lt.s32.totalorder %s1390_s21, 2  ;;  %s222_s13 = sand.u32 1, %s1386_s20  }
  0x4b   : > { %s964_s15 = sshll.u32 %s222_s13, 6  ;;  %s965_s14 = sshll.u32 %s1390_s21, 7 }
  0x4c   : > { %s2044_s0 = sld [smem:[#allocation18_spill]]  ;;  %s226_s26 = scalar_lea.vmem [#allocation2], %s964_s15 }
  0x4d   : > { %s232_s27 = sshll.u32 %s226_s26, 4  ;;  %p1563_p11 = pnand %p1119_p8, %p40_p5  ;;  %s1561_s27 = int_to_ptr.vmem [resolvable:$true] %s232_s27 }
  0x4e   : > { %s1567_s30 = scalar_lea.sflag [#allocation3], %s222_s13 }
  0x4f   : > { %p1284_p10 = pneg %p1563_p11 }
  0x52   : > { %s1559_s23 = scalar_lea.hbm %s2044_s0, %s965_s14  ;;  %s1287_s11 = scalar_lea.hbm %s2044_s0, 2048 }
  0x53   : > { %s1282_s6 = scalar_lea.hbm %s1559_s23, 1024  ;;  %p1288_p9 = scmp.lt.u32.totalorder %s1559_s23, %s2044_s0 }
  0x54   : > { %p1283_p7 = scmp.ne.s32.totalorder %s1559_s23, %s1282_s6  ;;  %p1289_p3 = scmp.lt.u32.totalorder %s1287_s11, %s1282_s6 }
  0x55   : > { %p1291_p1 = scmp.lt.u32.totalorder %s1282_s6, %s1559_s23 }
  0x56   : > { %p1285_p12 = pnand %p1284_p10, %p1283_p7  ;;  %p1290_p13 = por %p1289_p3, %p1288_p9 }
  0x58   : > { %p1286_p0 = pneg %p1285_p12  ;;  %p1292_p2 = por %p1291_p1, %p1290_p13 }
  0x5a   : > { %p1293_p5 = pnand %p1292_p2, %p1286_p0 }
  0x5c   : > { %1296 = shalt.err (!%p1293_p5)
}
  0x5d   : > { %s1297_s13 = scalar_lea.vmem %s1561_s27, 1024  ;;  %s1396_s16 = smov [#allocation2]  }
  0x5e   : > { %p1298_p4 = scmp.ne.s32.totalorder %s1561_s27, %s1297_s13  ;;  %s1302_s17 = sshll.u32 %s1396_s16, 4  ;;  %s1303_s17 = int_to_ptr.vmem [resolvable:$false] %s1302_s17 }
  0x5f   : > { %s1304_s26 = scalar_lea.vmem %s1303_s17, 2048  ;;  %p1305_p12 = scmp.lt.s32.totalorder %s1561_s27, %s1303_s17 }
  0x60   : > { %p1300_p8 = pnand %p1298_p4, %p1284_p10  ;;  %p1306_p9 = scmp.lt.s32.totalorder %s1304_s26, %s1297_s13 }
  0x62   : > { %p1301_p7 = pneg %p1300_p8  ;;  %p1307_p3 = por %p1306_p9, %p1305_p12 }
  0x64   : > { %p1308_p13 = pnand %p1307_p3, %p1301_p7 }
  0x66   : > { %1311 = shalt.err (!%p1308_p13)
}
  0x67   : > { %s1397_s6 = smov 256   ;;  %s1398_s7 = smov 128  }
  0x68   : > { %s1399_s10 = smov 8   ;;  %p2046_p10 = scmp.ne.s32.totalorder %s2039_s29, 0 }
  0x69   : > { %1110 = dma.hbm_to_vmem [thread:$0]  (!%p1563_p11), %s1559_s23, 1024, %s1561_s27, %s1567_s30, %s1397_s6, %s1398_s7, %s1399_s10  }
  0x6a   : > { %244 = sbr.rel (%p2046_p10) target bundleno = 343 (0x157), region = 40  ;;  %s1598_s11 = sand.u32 (!%p2046_p10), 1, %s1382_s19  }
  0x6b   : > { %s967_s15 = sshll.u32 (!%p2046_p10), %s1598_s11, 6  ;;  %s247_s14 = scalar_lea.sflag (!%p2046_p10), [#allocation3], %s1598_s11 }
  0x6c   : > { %s250_s13 = scalar_lea.vmem (!%p2046_p10), [#allocation2], %s967_s15  ;;  %p2047_p0 = scmp.ne.s32.totalorder (!%p2046_p10), %s2037_s24, 0 }
  0x71   : > { %1357 = dma.done.wait (%p2047_p0), %s247_s14, 1024  }
  0x72   : > { %1359 = vsyncadd (%p2047_p0), %s247_s14, 4294966272  ;;  %p2048_p1 = scmp.eq.s32.totalorder %s1458_s22, 0 }
  0x74   : > { %1361 = dma.done.wait (%p2048_p1), [#allocation5], 16   ;;  %p2049_p11 = pmov %p2048_p1 }
  0x75   : > { %p2050_p2 = pmov %p2048_p1 }
  0x76   : > { %1363 = vsyncadd (%p2049_p11), [#allocation5], 4294967280 }
  0x77   : > { %1365 = dma.done.wait (%p2050_p2), [#allocation8], 32   ;;  %p2051_p5 = pmov %p2048_p1 }
  0x78   : > { %p2052_p4 = pmov %p2048_p1 }
  0x79   : > { %1367 = vsyncadd (%p2051_p5), [#allocation8], 4294967264 }
  0x7a   : > { %1369 = dma.done.wait (%p2052_p4), [#allocation11], 16   ;;  %p2053_p8 = pmov %p2048_p1 }
  0x7c   : > { %1371 = vsyncadd (%p2053_p8), [#allocation11], 4294967280 }
  0x7d   : > { %271 = sfence }
  0x7e   : > { %v294_v0 = vld [vmem:[%s250_s13] sm:$0xff]  ;;  %v295_v1 = vld [vmem:[%s250_s13 + $0x8] sm:$0xff]  ;;  %v296_v2 = vld [vmem:[%s250_s13 + $0x10] sm:$0xff]  ;;  %s1618_s24 = sld [smem:[#allocation6]]  ;;  %s1620_s29 = sld [smem:[#allocation6 + $0x1]] }
  0x7f   : > { %v297_v3 = vld [vmem:[%s250_s13 + $0x18] sm:$0xff]  ;;  %v298_v4 = vld [vmem:[%s250_s13 + $0x20] sm:$0xff]  ;;  %v299_v5 = vld [vmem:[%s250_s13 + $0x28] sm:$0xff]  ;;  %v302_v6 = vand.u32 2147483647, %v294_v0  ;;  %s1622_s23 = sld [smem:[#allocation6 + $0x2]] }
  0x80   : > { %v300_v7 = vld [vmem:[%s250_s13 + $0x30] sm:$0xff]  ;;  %v301_v8 = vld [vmem:[%s250_s13 + $0x38] sm:$0xff]  ;;  %v303_v9 = vand.u32 2147483647, %v295_v1  ;;  %v304_v10 = vand.u32 2147483647, %v296_v2 }
  0x81   : > { %v305_v11 = vand.u32 2147483647, %v297_v3  ;;  %v306_v12 = vand.u32 2147483647, %v298_v4  ;;  %v307_v13 = vand.u32 2147483647, %v299_v5 }
  0x82   : > { %v308_v14 = vand.u32 2147483647, %v300_v7  ;;  %v309_v15 = vand.u32 2147483647, %v301_v8  ;;  %v310_v16 = vadd.f32 1e-06, %v302_v6 }
  0x83   : > { %v311_v17 = vadd.f32 1e-06, %v303_v9  ;;  %v312_v18 = vadd.f32 1e-06, %v304_v10  ;;  %v313_v19 = vadd.f32 1e-06, %v305_v11 }
  0x84   : > { %v314_v20 = vadd.f32 1e-06, %v306_v12  ;;  %1170 = vlog2.f32 %v310_v16  ;;  %v315_v21 = vadd.f32 1e-06, %v307_v13  ;;  %v316_v22 = vadd.f32 1e-06, %v308_v14 }
  0x85   : > { %1172 = vlog2.f32 %v311_v17  ;;  %s1624_s27 = sld [smem:[#allocation6 + $0x3]]  ;;  %s1626_s28 = sld [smem:[#allocation6 + $0x4]]  ;;  %v317_v23 = vadd.f32 1e-06, %v309_v15  ;;  %v335_v24 = vstv %s1618_s24  ;;  %v338_v26 = vstv %s1620_s29 }
  0x86   : > { %1174 = vlog2.f32 %v312_v18  ;;  %s1628_s30 = sld [smem:[#allocation6 + $0x5]]  ;;  %s1630_s16 = sld [smem:[#allocation6 + $0x6]]  ;;  %v342_v27 = vstv %s1622_s23 }
  0x87   : > { %1176 = vlog2.f32 %v313_v19  ;;  %s1632_s17 = sld [smem:[#allocation6 + $0x7]]  ;;  %s980_s26 = sld [smem:[#allocation6 + $0x8]] }
  0x88   : > { %1178 = vlog2.f32 %v314_v20  ;;  %s1634_s6 = sld [smem:[#allocation6 + $0x9]]  ;;  %s1636_s7 = sld [smem:[#allocation6 + $0xa]] }
  0x89   : > { %1180 = vlog2.f32 %v315_v21  ;;  %s1638_s10 = sld [smem:[#allocation6 + $0xb]]  ;;  %s1640_s15 = sld [smem:[#allocation6 + $0xc]] }
  0x8a   : > { %1182 = vlog2.f32 %v316_v22  ;;  %s1642_s14 = sld [smem:[#allocation6 + $0xd]]  ;;  %s1644_s13 = sld [smem:[#allocation6 + $0xe]] }
  0x8b   : > { %1184 = vlog2.f32 %v317_v23  ;;  %v346_v28 = vstv %s1624_s27  ;;  %v350_v29 = vstv %s1626_s28  ;;  %s1655_s0 = sld [smem:[#allocation6 + $0xf]]  ;;  %s1662_s24 = sld [smem:[#allocation6 + $0x10]] }
  0x8c   : > { %v354_v32 = vstv %s1628_s30  ;;  %v358_v37 = vstv %s1630_s16  ;;  %s1669_s29 = sld [smem:[#allocation6 + $0x11]]  ;;  %s1671_s23 = sld [smem:[#allocation6 + $0x12]] }
  0x8d   : > { %v371_v33 = vstv %s980_s26  ;;  %v362_v38 = vstv %s1632_s17  ;;  %s1678_s27 = sld [smem:[#allocation6 + $0x13]]  ;;  %s1685_s28 = sld [smem:[#allocation6 + $0x14]] }
  0x8e   : > { %v1171_v25 = vpop.eup %1170  ;;  %v374_v34 = vstv %s1634_s6  ;;  %v378_v39 = vstv %s1636_s7  ;;  %s1687_s30 = sld [smem:[#allocation6 + $0x15]]  ;;  %s1697_s16 = sld [smem:[#allocation6 + $0x16]] }
  0x8f   : > { %v1173_v30 = vpop.eup %1172  ;;  %v1651_v31 = vmul.f32 0.6931472, %v1171_v25  ;;  %v382_v44 = vstv %s1638_s10  ;;  %v386_v49 = vstv %s1640_s15  ;;  %s1702_s17 = sld [smem:[#allocation6 + $0x17]]  ;;  %s1708_s26 = sld [smem:[#allocation6 + $0x18]] }
  0x90   : > { %v1175_v35 = vpop.eup %1174  ;;  %v1657_v36 = vmul.f32 0.6931472, %v1173_v30  ;;  %v390_v54 = vstv %s1642_s14  ;;  %v394_v59 = vstv %s1644_s13  ;;  %s1710_s6 = sld [smem:[#allocation6 + $0x19]]  ;;  %s1714_s7 = sld [smem:[#allocation6 + $0x1a]] }
  0x91   : > { %v1177_v40 = vpop.eup %1176  ;;  %v1664_v41 = vmul.f32 0.6931472, %v1175_v35  ;;  %v336_v42 = vmul.f32 %v335_v24, %v1651_v31  ;;  %v372_v43 = vmul.f32 %v371_v33, %v1651_v31  ;;  %v398_v8 = vstv %s1655_s0  ;;  %s1720_s0 = sld [smem:[#allocation6 + $0x1b]]  ;;  %s1722_s10 = sld [smem:[#allocation6 + $0x1c]] }
  0x92   : > { %v1179_v45 = vpop.eup %1178  ;;  %v1673_v46 = vmul.f32 0.6931472, %v1177_v40  ;;  %v339_v47 = vmul.f32 %v338_v26, %v1657_v36  ;;  %v375_v48 = vmul.f32 %v374_v34, %v1657_v36  ;;  %v408_v14 = vstv %s1662_s24  ;;  %s1726_s15 = sld [smem:[#allocation7]]  ;;  %s1732_s14 = sld [smem:[#allocation6 + $0x1d]] }
  0x93   : > { %v1181_v50 = vpop.eup %1180  ;;  %v1680_v51 = vmul.f32 0.6931472, %v1179_v45  ;;  %v343_v52 = vmul.f32 %v342_v27, %v1664_v41  ;;  %v379_v53 = vmul.f32 %v378_v39, %v1664_v41  ;;  %v411_v15 = vstv %s1669_s29  ;;  %s1734_s13 = sld [smem:[#allocation7 + $0x1]]  ;;  %s1739_s24 = sld [smem:[#allocation6 + $0x1e]] }
  0x94   : > { %v1183_v55 = vpop.eup %1182  ;;  %v340_v56 = vadd.f32 %v339_v47, %v336_v42  ;;  %v347_v57 = vmul.f32 %v346_v28, %v1673_v46  ;;  %v376_v58 = vadd.f32 %v375_v48, %v372_v43  ;;  %v1691_v61 = vmul.f32 0.6931472, %v1181_v50  ;;  %s1742_s29 = sld [smem:[#allocation6 + $0x1f]]  ;;  %s1791_s1 = sld [smem:[#allocation6 + $0x2c]] }
  0x95   : > { %v1185_v60 = vpop.eup %1184  ;;  %v1693_v62 = vmul.f32 0.6931472, %v1183_v55  ;;  %v351_v63 = vmul.f32 %v350_v29, %v1680_v51  ;;  %v383_v0 = vmul.f32 %v382_v44, %v1673_v46  ;;  %v387_v4 = vmul.f32 %v386_v49, %v1680_v51 }
  0x96   : > { %v1699_v1 = vmul.f32 0.6931472, %v1185_v60  ;;  %v344_v2 = vadd.f32 %v343_v52, %v340_v56  ;;  %v380_v3 = vadd.f32 %v379_v53, %v376_v58  ;;  %v355_v5 = vmul.f32 %v354_v32, %v1691_v61 }
  0x97   : > { %v359_v6 = vmul.f32 %v358_v37, %v1693_v62  ;;  %v391_v7 = vmul.f32 %v390_v54, %v1691_v61  ;;  %v395_v12 = vmul.f32 %v394_v59, %v1693_v62  ;;  %v415_v16 = vstv %s1671_s23  ;;  %s1744_s23 = sld [smem:[#allocation6 + $0x20]] }
  0x98   : > { %v348_v9 = vadd.f32 %v347_v57, %v344_v2  ;;  %v363_v10 = vmul.f32 %v362_v38, %v1699_v1  ;;  %v384_v11 = vadd.f32 %v383_v0, %v380_v3  ;;  %v399_v13 = vmul.f32 %v398_v8, %v1699_v1 }
  0x99   : > { %v409_v19 = vmul.f32 %v408_v14, %v1651_v31  ;;  %v412_v20 = vmul.f32 %v411_v15, %v1657_v36  ;;  %v416_v21 = vmul.f32 %v415_v16, %v1664_v41  ;;  %v419_v22 = vstv %s1678_s27  ;;  %s1750_s27 = sld [smem:[#allocation6 + $0x21]] }
  0x9a   : > { %v352_v17 = vadd.f32 %v351_v63, %v348_v9  ;;  %v388_v18 = vadd.f32 %v387_v4, %v384_v11  ;;  %v423_v23 = vstv %s1685_s28  ;;  %v427_v24 = vstv %s1687_s30  ;;  %s1752_s28 = sld [smem:[#allocation6 + $0x22]]  ;;  %s1755_s30 = sld [smem:[#allocation6 + $0x23]] }
  0x9b   : > { %v413_v27 = vadd.f32 %v412_v20, %v409_v19  ;;  %v420_v28 = vmul.f32 %v419_v22, %v1673_v46  ;;  %v424_v29 = vmul.f32 %v423_v23, %v1680_v51  ;;  %v431_v30 = vstv %s1697_s16  ;;  %s1761_s16 = sld [smem:[#allocation6 + $0x24]] }
  0x9c   : > { %v356_v25 = vadd.f32 %v355_v5, %v352_v17  ;;  %v392_v26 = vadd.f32 %v391_v7, %v388_v18  ;;  %v428_v35 = vmul.f32 %v427_v24, %v1691_v61  ;;  %v432_v37 = vmul.f32 %v431_v30, %v1693_v62 }
  0x9d   : > { %v417_v34 = vadd.f32 %v416_v21, %v413_v27  ;;  %v435_v38 = vstv %s1702_s17  ;;  %v449_v39 = vstv %s1708_s26  ;;  %v452_v40 = vstv %s1710_s6  ;;  %s1763_s17 = sld [smem:[#allocation6 + $0x25]]  ;;  %s1769_s26 = sld [smem:[#allocation6 + $0x26]] }
  0x9e   : > { %v360_v32 = vadd.f32 %v359_v6, %v356_v25  ;;  %v396_v33 = vadd.f32 %v395_v12, %v392_v26  ;;  %v450_v45 = vmul.f32 %v449_v39, %v1651_v31  ;;  %v453_v47 = vmul.f32 %v452_v40, %v1657_v36  ;;  %s1773_s6 = sld [smem:[#allocation6 + $0x27]] }
  0x9f   : > { %v421_v44 = vadd.f32 %v420_v28, %v417_v34  ;;  %v456_v48 = vstv %s1714_s7  ;;  %v460_v49 = vstv %s1720_s0  ;;  %v464_v50 = vstv %s1722_s10  ;;  %s1775_s7 = sld [smem:[#allocation6 + $0x28]]  ;;  %s1779_s0 = sld [smem:[#allocation6 + $0x29]] }
  0xa0   : > { %v364_v42 = vadd.f32 %v363_v10, %v360_v32  ;;  %v400_v43 = vadd.f32 %v399_v13, %v396_v33  ;;  %v457_v55 = vmul.f32 %v456_v48, %v1664_v41  ;;  %v368_v56 = vstv %s1726_s15  ;;  %s1781_s10 = sld [smem:[#allocation6 + $0x2a]]  ;;  %s1848_s15 = sld [smem:[#allocation6 + $0x36]] }
  0xa1   : > { %v425_v54 = vadd.f32 %v424_v29, %v421_v44  ;;  %v454_v57 = vadd.f32 %v453_v47, %v450_v45  ;;  %v461_v58 = vmul.f32 %v460_v49, %v1673_v46  ;;  %v468_v59 = vstv %s1732_s14  ;;  %s1789_s14 = sld [smem:[#allocation6 + $0x2b]] }
  0xa2   : > { %v366_v52 = vmul.f32 1.442695, %v364_v42  ;;  %v402_v53 = vmul.f32 1.442695, %v400_v43  ;;  %v404_v60 = vstv %s1734_s13  ;;  %v436_v0 = vmul.f32 %v435_v38, %v1699_v1  ;;  %s1850_s13 = sld [smem:[#allocation6 + $0x38]] }
  0xa3   : > { %v429_v63 = vadd.f32 %v428_v35, %v425_v54  ;;  %v458_v2 = vadd.f32 %v457_v55, %v454_v57  ;;  %v465_v3 = vmul.f32 %v464_v50, %v1680_v51  ;;  %v469_v4 = vmul.f32 %v468_v59, %v1691_v61 }
  0xa4   : > { %1186 = vpow2.f32 %v366_v52  ;;  %v472_v6 = vstv %s1739_s24  ;;  %v476_v7 = vstv %s1742_s29  ;;  %v485_v8 = vstv %s1744_s23  ;;  %s1799_s24 = sld [smem:[#allocation6 + $0x2d]]  ;;  %s1801_s29 = sld [smem:[#allocation6 + $0x2e]] }
  0xa5   : > { %1188 = vpow2.f32 %v402_v53  ;;  %v433_v5 = vadd.f32 %v432_v37, %v429_v63  ;;  %v462_v9 = vadd.f32 %v461_v58, %v458_v2  ;;  %v486_v10 = vmul.f32 %v485_v8, %v1651_v31  ;;  %s1805_s23 = sld [smem:[#allocation7 + $0x2]] }
  0xa6   : > { %v488_v11 = vstv %s1750_s27  ;;  %v492_v12 = vstv %s1752_s28  ;;  %v496_v16 = vstv %s1755_s30  ;;  %v473_v18 = vmul.f32 %v472_v6, %v1693_v62  ;;  %s1810_s27 = sld [smem:[#allocation6 + $0x2f]]  ;;  %s1814_s28 = sld [smem:[#allocation6 + $0x30]] }
  0xa7   : > { %v437_v13 = vadd.f32 %v436_v0, %v433_v5  ;;  %v489_v14 = vmul.f32 %v488_v11, %v1657_v36  ;;  %v493_v15 = vmul.f32 %v492_v12, %v1664_v41  ;;  %v466_v17 = vadd.f32 %v465_v3, %v462_v9  ;;  %s1816_s30 = sld [smem:[#allocation6 + $0x31]] }
  0xa8   : > { %v500_v19 = vstv %s1761_s16  ;;  %v504_v20 = vstv %s1763_s17  ;;  %v477_v22 = vmul.f32 %v476_v7, %v1699_v1  ;;  %v497_v24 = vmul.f32 %v496_v16, %v1673_v46  ;;  %s1821_s16 = sld [smem:[#allocation6 + $0x32]]  ;;  %s1823_s17 = sld [smem:[#allocation6 + $0x33]] }
  0xa9   : > { %v439_v21 = vmul.f32 1.442695, %v437_v13  ;;  %v490_v23 = vadd.f32 %v489_v14, %v486_v10  ;;  %v470_v25 = vadd.f32 %v469_v4, %v466_v17  ;;  %v501_v26 = vmul.f32 %v500_v19, %v1680_v51 }
  0xaa   : > { %v505_v27 = vmul.f32 %v504_v20, %v1691_v61  ;;  %v508_v28 = vstv %s1769_s26  ;;  %v512_v32 = vstv %s1773_s6  ;;  %v522_v34 = vstv %s1775_s7  ;;  %s1832_s26 = sld [smem:[#allocation6 + $0x34]]  ;;  %s1837_s6 = sld [smem:[#allocation6 + $0x35]] }
  0xab   : > { %1190 = vpow2.f32 %v439_v21  ;;  %v494_v29 = vadd.f32 %v493_v15, %v490_v23  ;;  %v509_v30 = vmul.f32 %v508_v28, %v1693_v62  ;;  %v474_v33 = vadd.f32 %v473_v18, %v470_v25  ;;  %s1854_s7 = sld [smem:[#allocation6 + $0x37]] }
  0xac   : > { %v525_v35 = vstv %s1779_s0  ;;  %v529_v37 = vstv %s1781_s10  ;;  %v523_v40 = vmul.f32 %v522_v34, %v1651_v31  ;;  %v533_v48 = vstv %s1789_s14  ;;  %s1856_s0 = sld [smem:[#allocation6 + $0x39]]  ;;  %s1862_s10 = sld [smem:[#allocation6 + $0x3a]] }
  0xad   : > { %v498_v39 = vadd.f32 %v497_v24, %v494_v29  ;;  %v526_v42 = vmul.f32 %v525_v35, %v1657_v36  ;;  %v530_v43 = vmul.f32 %v529_v37, %v1664_v41  ;;  %v478_v47 = vadd.f32 %v477_v22, %v474_v33  ;;  %s1864_s14 = sld [smem:[#allocation6 + $0x3b]] }
  0xae   : > { %v1187_v38 = vpop.eup %1186  ;;  %v537_v49 = vstv %s1791_s1  ;;  %v534_v54 = vmul.f32 %v533_v48, %v1673_v46  ;;  %v513_v57 = vmul.f32 %v512_v32, %v1699_v1  ;;  %v541_v58 = vstv %s1799_s24  ;;  %s1842_s1 = sld [smem:[#allocation7 + $0x3]]  ;;  %s1868_s24 = sld [smem:[#allocation7 + $0x4]] }
  0xaf   : > { %v1189_v44 = vpop.eup %1188  ;;  %v369_v45 = vmul.f32 %v1187_v38, %v368_v56  ;;  %v502_v52 = vadd.f32 %v501_v26, %v498_v39  ;;  %v527_v53 = vadd.f32 %v526_v42, %v523_v40  ;;  %v480_v55 = vmul.f32 1.442695, %v478_v47 }
  0xb0   : > { %v405_v50 = vmul.f32 %v1189_v44, %v404_v60  ;;  %v545_v56 = vstv %s1801_s29  ;;  %v538_v60 = vmul.f32 %v537_v49, %v1680_v51  ;;  %v441_v2 = vstv %s1805_s23  ;;  %s1873_s29 = sld [smem:[#allocation6 + $0x3c]]  ;;  %s1876_s23 = sld [smem:[#allocation6 + $0x3d]] }
  0xb1   : > { %v506_v63 = vadd.f32 %v505_v27, %v502_v52  ;;  %v531_v0 = vadd.f32 %v530_v43, %v527_v53  ;;  %1192 = vpow2.f32 %v480_v55  ;;  %v542_v3 = vmul.f32 %v541_v58, %v1691_v61 }
  0xb2   : > { %v406_v59 = vadd.f32 %v405_v50, %v369_v45  ;;  %v546_v4 = vmul.f32 %v545_v56, %v1693_v62  ;;  %v549_v7 = vstv %s1810_s27  ;;  %v667_v8 = vstv %s1814_s28  ;;  %s1880_s27 = sld [smem:[#allocation6 + $0x3e]]  ;;  %s1883_s28 = sld [smem:[#allocation6 + $0x3f]] }
  0xb3   : > { %v510_v5 = vadd.f32 %v509_v30, %v506_v63  ;;  %v535_v6 = vadd.f32 %v534_v54, %v531_v0  ;;  %v668_v9 = vmul.f32 %v667_v8, %v1651_v31  ;;  %v670_v10 = vstv %s1816_s30  ;;  %s1885_s30 = sld [smem:[#allocation6 + $0x40]] }
  0xb4   : > { %v674_v11 = vstv %s1821_s16  ;;  %v678_v12 = vstv %s1823_s17  ;;  %v671_v16 = vmul.f32 %v670_v10, %v1657_v36  ;;  %v550_v19 = vmul.f32 %v549_v7, %v1699_v1  ;;  %s1891_s16 = sld [smem:[#allocation6 + $0x41]]  ;;  %s1893_s17 = sld [smem:[#allocation6 + $0x42]] }
  0xb5   : > { %v1191_v13 = vpop.eup %1190  ;;  %v514_v14 = vadd.f32 %v513_v57, %v510_v5  ;;  %v539_v15 = vadd.f32 %v538_v60, %v535_v6  ;;  %v675_v17 = vmul.f32 %v674_v11, %v1664_v41  ;;  %v679_v20 = vmul.f32 %v678_v12, %v1673_v46 }
  0xb6   : > { %v442_v18 = vmul.f32 %v1191_v13, %v441_v2  ;;  %v682_v21 = vstv %s1832_s26  ;;  %v672_v24 = vadd.f32 %v671_v16, %v668_v9  ;;  %v686_v25 = vstv %s1837_s6  ;;  %s1901_s26 = sld [smem:[#allocation6 + $0x43]]  ;;  %s1903_s6 = sld [smem:[#allocation6 + $0x44]] }
  0xb7   : > { %v516_v22 = vmul.f32 1.442695, %v514_v14  ;;  %v543_v23 = vadd.f32 %v542_v3, %v539_v15  ;;  %v683_v29 = vmul.f32 %v682_v21, %v1680_v51  ;;  %v482_v30 = vstv %s1842_s1  ;;  %s1910_s1 = sld [smem:[#allocation6 + $0x45]] }
  0xb8   : > { %v1878_v26 = vadd.f32 %v442_v18, %v406_v59  ;;  %v676_v28 = vadd.f32 %v675_v17, %v672_v24  ;;  %v687_v32 = vmul.f32 %v686_v25, %v1691_v61  ;;  %v690_v33 = vstv %s1848_s15  ;;  %s1912_s15 = sld [smem:[#allocation7 + $0x5]] }
  0xb9   : > { %1194 = vpow2.f32 %v516_v22  ;;  %v547_v27 = vadd.f32 %v546_v4, %v543_v23  ;;  %v703_v34 = vstv %s1850_s13  ;;  %v706_v39 = vstv %s1856_s0  ;;  %s1918_s13 = sld [smem:[#allocation6 + $0x46]] }
  0xba   : > { %v680_v37 = vadd.f32 %v679_v20, %v676_v28  ;;  %v704_v38 = vmul.f32 %v703_v34, %v1651_v31  ;;  %v694_v42 = vstv %s1854_s7  ;;  %v707_v43 = vmul.f32 %v706_v39, %v1657_v36  ;;  %s1926_s7 = sld [smem:[#allocation6 + $0x47]]  ;;  %s1947_s0 = sld [smem:[#allocation7 + $0x6]] }
  0xbb   : > { %v551_v35 = vadd.f32 %v550_v19, %v547_v27  ;;  %v1193_v40 = vpop.eup %1192  ;;  %v710_v44 = vstv %s1862_s10  ;;  %v714_v45 = vstv %s1864_s14  ;;  %v691_v49 = vmul.f32 %v690_v33, %v1693_v62  ;;  %s1949_s10 = sld [smem:[#allocation7 + $0x7]]  ;;  %s1951_s14 = sld [smem:[#allocation7 + $0x8]] }
  0xbc   : > { %v684_v48 = vadd.f32 %v683_v29, %v680_v37  ;;  %v711_v50 = vmul.f32 %v710_v44, %v1664_v41  ;;  %v518_v52 = vstv %s1868_s24  ;;  %v708_v53 = vadd.f32 %v707_v43, %v704_v38  ;;  %s781_s24 = sld [smem:[#allocation9]] }
  0xbd   : > { %v553_v47 = vmul.f32 1.442695, %v551_v35  ;;  %v715_v54 = vmul.f32 %v714_v45, %v1673_v46  ;;  %v718_v55 = vstv %s1873_s29  ;;  %v695_v58 = vmul.f32 %v694_v42, %v1699_v1  ;;  %s1056_s29 = sld [smem:[#allocation9 + $0x1]] }
  0xbe   : > { %v688_v57 = vadd.f32 %v687_v32, %v684_v48  ;;  %v722_v56 = vstv %s1876_s23  ;;  %v483_v59 = vmul.f32 %v1193_v40, %v482_v30  ;;  %v712_v63 = vadd.f32 %v711_v50, %v708_v53  ;;  %s1057_s23 = sld [smem:[#allocation9 + $0x2]] }
  0xbf   : > { %1196 = vpow2.f32 %v553_v47  ;;  %v719_v0 = vmul.f32 %v718_v55, %v1680_v51  ;;  %v726_v60 = vstv %s1880_s27  ;;  %v723_v3 = vmul.f32 %v722_v56, %v1691_v61  ;;  %s1058_s27 = sld [smem:[#allocation9 + $0x3]] }
  0xc0   : > { %v692_v2 = vadd.f32 %v691_v49, %v688_v57  ;;  %v727_v4 = vmul.f32 %v726_v60, %v1693_v62  ;;  %v730_v5 = vstv %s1883_s28  ;;  %v716_v6 = vadd.f32 %v715_v54, %v712_v63  ;;  %s1062_s28 = sld [smem:[#allocation9 + $0x6]] }
  0xc1   : > { %v740_v7 = vstv %s1885_s30  ;;  %v743_v8 = vstv %s1891_s16  ;;  %v747_v9 = vstv %s1893_s17  ;;  %v751_v17 = vstv %s1901_s26  ;;  %s1059_s30 = sld [smem:[#allocation9 + $0x4]]  ;;  %s1060_s16 = sld [smem:[#allocation9 + $0x5]] }
  0xc2   : > { %v696_v11 = vadd.f32 %v695_v58, %v692_v2  ;;  %v741_v12 = vmul.f32 %v740_v7, %v1651_v31  ;;  %v744_v13 = vmul.f32 %v743_v8, %v1657_v36  ;;  %v748_v14 = vmul.f32 %v747_v9, %v1664_v41  ;;  %s1063_s17 = sld [smem:[#allocation9 + $0x7]]  ;;  %s1064_s26 = sld [smem:[#allocation9 + $0x8]] }
  0xc3   : > { %v1195_v10 = vpop.eup %1194  ;;  %v720_v16 = vadd.f32 %v719_v0, %v716_v6  ;;  %v755_v18 = vstv %s1903_s6  ;;  %v752_v20 = vmul.f32 %v751_v17, %v1673_v46  ;;  %v731_v22 = vmul.f32 %v730_v5, %v1699_v1  ;;  %s792_s6 = sld [smem:[#allocation10]] }
  0xc4   : > { %v519_v15 = vmul.f32 %v1195_v10, %v518_v52  ;;  %v745_v19 = vadd.f32 %v744_v13, %v741_v12  ;;  %v759_v23 = vstv %s1910_s1  ;;  %v555_v24 = vstv %s1912_s15  ;;  %s1061_s1 = sld [smem:[#allocation10 + $0x1]]  ;;  %s1065_s15 = sld [smem:[#allocation10 + $0x2]] }
  0xc5   : > { %v724_v21 = vadd.f32 %v723_v3, %v720_v16  ;;  %v756_v31 = vmul.f32 %v755_v18, %v1680_v51  ;;  %v763_v28 = vstv %s1918_s13  ;;  %v760_v30 = vmul.f32 %v759_v23, %v1691_v61  ;;  %s972_s13 = sshll.u32 %s1598_s11, 3 }
  0xc6   : > { %v749_v25 = vadd.f32 %v748_v14, %v745_v19  ;;  %v520_v36 = vadd.f32 %v519_v15, %v483_v59  ;;  %v698_v33 = vmul.f32 1.442695, %v696_v11  ;;  %v767_v46 = vstv %s1926_s7  ;;  %s1067_s7 = sshll.u32 %s1458_s22, 7  ;;  %s1406_s22 = smov [#allocation12]  }
  0xc7   : > { %v728_v27 = vadd.f32 %v727_v4, %v724_v21  ;;  %v764_v37 = vmul.f32 %v763_v28, %v1693_v62  ;;  %v768_v51 = vmul.f32 %v767_v46, %v1699_v1  ;;  %v700_v54 = vstv %s1947_s0  ;;  %s293_s0 = scalar_lea.vmem [#allocation12], %s972_s13 }
  0xc8   : > { %v753_v29 = vadd.f32 %v752_v20, %v749_v25  ;;  %1198 = vpow2.f32 %v698_v33  ;;  %v736_v57 = vstv %s1949_s10  ;;  %v773_v58 = vstv %s1951_s14  ;;  %s846_s10 = sshll.u32 %s293_s0, 4  ;;  %s1984_s10 = int_to_ptr.vmem [resolvable:$true] %s846_s10 }
  0xc9   : > { %v1197_v41 = vpop.eup %1196  ;;  %v732_v34 = vadd.f32 %v731_v22, %v728_v27  ;;  %v1400_v59 = vmov 683565275   ;;  %v1401_v0 = vmov 2475754826   ;;  %v1402_v2 = vmov 2131351028  }
  0xca   : > { %v556_v32 = vmul.f32 %v1197_v41, %v555_v24  ;;  %v757_v35 = vadd.f32 %v756_v31, %v753_v29  ;;  %v1403_v5 = vmov 2102212464   ;;  %v1404_v7 = vmov 920167782  }
  0xcb   : > { %v734_v39 = vmul.f32 1.442695, %v732_v34  ;;  %v1405_v16 = vmov 1326507024  }
  0xcc   : > { %v1942_v38 = vadd.f32 %v556_v32, %v520_v36  ;;  %v761_v40 = vadd.f32 %v760_v30, %v757_v35 }
  0xcd   : > { %1200 = vpow2.f32 %v734_v39 }
  0xce   : > { %v561_v42 = vand.u32 2139095040, %v1942_v38  ;;  %v558_v43 = vand.u32 2147483647, %v1942_v38  ;;  %v765_v44 = vadd.f32 %v764_v37, %v761_v40  ;;  %vm560_vm7 = vcmp.lt.s32.totalorder %v1942_v38, 0 }
  0xcf   : > { %vm650_vm12 = vweird.f32 %v1942_v38 }
  0xd0   : > { %v562_v61 = vshrl.u32 %v561_v42, 23  ;;  %v769_v62 = vadd.f32 %v768_v51, %v765_v44  ;;  %v565_v1 = vand.u32 8388607, %v558_v43  ;;  %vm559_vm8 = vcmp.le.f32.partialorder %v558_v43, 0.7853982 }
  0xd2   : > { %v1025_v45 = vadd.s32 4294967169, %v562_v61  ;;  %v771_v47 = vmul.f32 1.442695, %v769_v62  ;;  %v566_v49 = vor.u32 8388608, %v565_v1  ;;  %v1199_v52 = vpop.eup %1198 }
  0xd3   : > { %v701_v10 = vmul.f32 %v1199_v52, %v700_v54 }
  0xd4   : > { %v568_v48 = vadd.s32 1, %v1025_v45  ;;  %1202 = vpow2.f32 %v771_v47  ;;  %v606_v9 = vshll.u32 %v566_v49, 8 }
  0xd6   : > { %vm569_vm0 = vcmp.gt.s32.totalorder %v568_v48, 0 }
  0xd7   : > { %v570_v50 = vsel %vm569_vm0, %v568_v48, 0  ;;  %v1201_v4 = vpop.eup %1200 }
  0xd8   : > { %v572_v53 = vand.u32 31, %v570_v50  ;;  %v571_v55 = vshrl.u32 %v570_v50, 5  ;;  %v737_v21 = vmul.f32 %v1201_v4, %v736_v57 }
  0xda   : > { %v573_v56 = vsub.s32 32, %v572_v53  ;;  %v575_v63 = vshll.u32 %v1400_v59, %v572_v53  ;;  %v578_v60 = vshll.u32 %v1401_v0, %v572_v53  ;;  %v581_v3 = vshll.u32 %v1402_v2, %v572_v53 }
  0xdb   : > { %v584_v6 = vshll.u32 %v1403_v5, %v572_v53  ;;  %v587_v8 = vshll.u32 %v1404_v7, %v572_v53  ;;  %vm590_vm1 = vcmp.lt.s32.totalorder %v571_v55, 1  ;;  %vm593_vm2 = vcmp.lt.s32.totalorder %v571_v55, 4 }
  0xdc   : > { %v574_v11 = vshrl.u32 %v1400_v59, %v573_v56  ;;  %v576_v12 = vshrl.u32 %v1401_v0, %v573_v56  ;;  %v579_v13 = vshrl.u32 %v1402_v2, %v573_v56  ;;  %v582_v14 = vshrl.u32 %v1403_v5, %v573_v56 }
  0xdd   : > { %v585_v15 = vshrl.u32 %v1404_v7, %v573_v56  ;;  %v588_v17 = vshrl.u32 %v1405_v16, %v573_v56  ;;  %vm591_vm3 = vcmp.lt.s32.totalorder %v571_v55, 2  ;;  %vm592_vm4 = vcmp.lt.s32.totalorder %v571_v55, 3 }
  0xde   : > { %v577_v18 = vor.u32 %v576_v12, %v575_v63  ;;  %v580_v19 = vor.u32 %v579_v13, %v578_v60  ;;  %v583_v20 = vor.u32 %v582_v14, %v581_v3  ;;  %v1203_v22 = vpop.eup %1202  ;;  %v738_v30 = vadd.f32 %v737_v21, %v701_v10 }
  0xdf   : > { %v586_v23 = vor.u32 %v585_v15, %v584_v6  ;;  %v589_v24 = vor.u32 %v588_v17, %v587_v8  ;;  %v774_v34 = vmul.f32 %v1203_v22, %v773_v58  ;;  %v444_v17 = vand.u32 2147483647, %v1878_v26 }
  0xe0   : > { %v594_v25 = vsel %vm590_vm1, %v574_v11, %v577_v18  ;;  %v595_v31 = vsel %vm593_vm2, %v583_v20, 2102212464  ;;  %v598_v36 = vsel %vm590_vm1, %v577_v18, %v580_v19  ;;  %v602_v27 = vsel %vm590_vm1, %v580_v19, %v583_v20 }
  0xe1   : > { %v596_v28 = vsel %vm592_vm4, %v580_v19, %v595_v31  ;;  %v599_v41 = vsel %vm593_vm2, %v586_v23, 920167782  ;;  %v603_v29 = vsel %vm593_vm2, %v589_v24, 1326507024  ;;  %v775_v44 = vadd.f32 %v774_v34, %v738_v30 }
  0xe2   : > { %v600_v32 = vsel %vm592_vm4, %v583_v20, %v599_v41  ;;  %v604_v33 = vsel %vm592_vm4, %v586_v23, %v603_v29  ;;  %v597_v46 = vsel %vm591_vm3, %v594_v25, %v596_v28  ;;  %v445_v21 = vadd.f32 1e-06, %v444_v17 }
  0xe3   : > { %v601_v35 = vsel %vm591_vm3, %v598_v36, %v600_v32  ;;  %v605_v37 = vsel %vm591_vm3, %v602_v27, %v604_v33  ;;  %v613_v61 = vmul.u32 %v606_v9, %v597_v46  ;;  %1204 = vtanh.f32 %v775_v44 }
  0xe4   : > { %v1961_v39 = vmul.u32.u64.low %v606_v9, %v605_v37  ;;  %v1962_v40 = vmul.u32.u64.high %v606_v9, %v605_v37, %v1961_v39  ;;  %v1964_v51 = vmul.u32.u64.low %v606_v9, %v601_v35  ;;  %v1965_v42 = vmul.u32.u64.high %v606_v9, %v601_v35, %v1964_v51 }
  0xe5   : > { %v782_v30 = vstv %s781_s24  ;;  %v798_v32 = vstv %s1058_s27  ;;  %v815_v33 = vstv %s1062_s28  ;;  %v789_v34 = vstv %s1057_s23  ;;  %s833_s23 = scalar_lea.sflag [#allocation4], %s1598_s11  ;;  %s1312_s27 = scalar_lea.vmem %s1984_s10, 128 }
  0xe6   : > { %vm615_vm5 = vc.u32 %v1962_v40, %v1964_v51  ;;  %v616_v62 = vadd.s32 1, %v1965_v42  ;;  %v614_v57 = vadd.s32 %v1964_v51, %v1962_v40  ;;  %v805_v46 = vstv %s1060_s16  ;;  %p1313_p7 = scmp.ne.s32.totalorder %s1984_s10, %s1312_s27  ;;  %s1316_s28 = sshll.u32 %s1406_s22, 4  ;;  %s1317_s28 = int_to_ptr.vmem [resolvable:$false] %s1316_s28 }
  0xe7   : > { %v785_v37 = vstv %s1056_s29  ;;  %v801_v39 = vstv %s1059_s30  ;;  %v818_v40 = vstv %s1063_s17  ;;  %v822_v51 = vstv %s1064_s26  ;;  %s1982_s29 = scalar_lea.hbm %s2031_s5, %s1067_s7  ;;  %s1318_s30 = scalar_lea.vmem %s1317_s28, 256 }
  0xe8   : > { %v617_v45 = vsel %vm615_vm5, %v616_v62, %v1965_v42  ;;  %p1314_p12 = pnand %p1313_p7, %p1549_p6  ;;  %p1319_p3 = scmp.lt.s32.totalorder %s1984_s10, %s1317_s28 }
  0xe9   : > { %v618_v1 = vadd.s32 %v617_v45, %v613_v61  ;;  %p1320_p13 = scmp.lt.s32.totalorder %s1318_s30, %s1312_s27 }
  0xea   : > { %p1315_p9 = pneg %p1314_p12 }
  0xeb   : > { %v619_v47 = vadd.s32 536870912, %v618_v1  ;;  %p1321_p10 = por %p1320_p13, %p1319_p3 }
  0xed   : > { %v620_v48 = vshrl.u32 %v619_v47, 30  ;;  %v1205_v15 = vpop.eup %1204  ;;  %p1322_p0 = pnand %p1321_p10, %p1315_p9 }
  0xee   : > { %v777_v18 = vand.u32 2147483647, %v1205_v15 }
  0xef   : > { %v621_v49 = vshll.u32 %v620_v48, 30  ;;  %v644_v7 = vsub.s32 4, %v620_v48 }
  0xf0   : > { %v778_v23 = vadd.f32 1e-06, %v777_v18 }
  0xf1   : > { %v622_v50 = vsub.s32 %v618_v1, %v621_v49  ;;  %v645_v10 = vsel %vm560_vm7, %v644_v7, %v620_v48 }
  0xf2   : > { %v647_v13 = vsel %vm559_vm8, 0, %v645_v10 }
  0xf3   : > { %v624_v52 = vsub.s32 0, %v622_v50  ;;  %v651_v14 = vadd.s32 3, %v647_v13 }
  0xf5   : > { %v1026_v53 = vmin.u32 %v624_v52, %v622_v50  ;;  %v652_v16 = vand.u32 3, %v651_v14 }
  0xf7   : > { %v626_v54 = vclz %v1026_v53  ;;  %vm657_vm9 = vcmp.eq.s32.totalorder %v652_v16, 2  ;;  %vm654_vm10 = vcmp.eq.s32.totalorder %v652_v16, 0  ;;  %vm653_vm11 = vcmp.lt.s32.totalorder %v652_v16, 2 }
  0xf9   : > { %v1027_v55 = vadd.s32 4294967294, %v626_v54 }
  0xfb   : > { %vm1028_vm6 = vcmp.lt.s32.totalorder %v1027_v55, 0 }
  0xfc   : > { %v629_v58 = vsel %vm1028_vm6, 0, %v1027_v55 }
  0xfd   : > { %v630_v56 = vsub.s32 32, %v629_v58  ;;  %v631_v59 = vshll.u32 %v622_v50, %v629_v58  ;;  %v634_v63 = vsub.s32 4294967266, %v629_v58 }
  0xff   : > { %v632_v0 = vshrl.u32 %v614_v57, %v630_v56  ;;  %v635_v60 = vadd.s32 127, %v634_v63 }
 0x101   : > { %v633_v2 = vor.u32 %v632_v0, %v631_v59  ;;  %v636_v3 = vshll.u32 %v635_v60, 23  ;;  %v795_v0 = vstv %s792_s6  ;;  %v811_v60 = vstv %s1061_s1 }
 0x103   : > { %v637_v4 = vor.u32 4788187, %v636_v3  ;;  %v640_v5 = vcvt.s32.f32 %v633_v2  ;;  %v828_v3 = vstv %s1065_s15 }
 0x105   : > { %v638_v6 = vand.u32 2147483647, %v637_v4 }
 0x107   : > { %v641_v8 = vmul.f32 %v640_v5, %v638_v6 }
 0x109   : > { %v642_v9 = vxor.u32 2147483648, %v641_v8 }
 0x10b   : > { %v643_v11 = vsel %vm560_vm7, %v642_v9, %v641_v8 }
 0x10c   : > { %v646_v12 = vsel %vm559_vm8, %v1942_v38, %v643_v11 }
 0x10d   : > { %1206 = vcosq.f32 %v646_v12 }
 0x10e   : > { %1208 = vsinq.f32 %v646_v12 }
 0x10f   : > { %1210 = vlog2.f32 %v445_v21 }
 0x110   : > { %1212 = vlog2.f32 %v778_v23 }
 0x117   : > { %v1207_v19 = vpop.eup %1206 }
 0x118   : > { %v1209_v20 = vpop.eup %1208  ;;  %v658_v43 = vxor.u32 2147483648, %v1207_v19 }
 0x119   : > { %v655_v22 = vxor.u32 2147483648, %v1209_v20  ;;  %v1211_v28 = vpop.eup %1210 }
 0x11a   : > { %v659_v24 = vsel %vm657_vm9, %v658_v43, %v1209_v20  ;;  %v1213_v38 = vpop.eup %1212  ;;  %v447_v41 = vmul.f32 0.6931472, %v1211_v28 }
 0x11b   : > { %v656_v25 = vsel %vm654_vm10, %v1207_v19, %v655_v22  ;;  %v780_v29 = vmul.f32 0.6931472, %v1213_v38 }
 0x11c   : > { %v660_v31 = vsel %vm653_vm11, %v656_v25, %v659_v24  ;;  %v783_v44 = vmul.f32 %v782_v30, %v447_v41  ;;  %v799_v61 = vmul.f32 %v798_v32, %v447_v41  ;;  %v816_v62 = vmul.f32 %v815_v33, %v447_v41 }
 0x11d   : > { %v661_v36 = vsel %vm650_vm12, nan, %v660_v31  ;;  %v790_v45 = vmul.f32 %v789_v34, %v780_v29  ;;  %v806_v1 = vmul.f32 %v805_v46, %v780_v29  ;;  %v823_v50 = vmul.f32 %v822_v51, %v780_v29 }
 0x11e   : > { %v662_v27 = vand.u32 2147483647, %v661_v36 }
 0x120   : > { %v663_v26 = vadd.f32 1e-06, %v662_v27 }
 0x122   : > { %1214 = vlog2.f32 %v663_v26 }
 0x12c   : > { %v1215_v35 = vpop.eup %1214 }
 0x12d   : > { %v665_v42 = vmul.f32 0.6931472, %v1215_v35 }
 0x12f   : > { %v786_v47 = vmul.f32 %v785_v37, %v665_v42  ;;  %v802_v48 = vmul.f32 %v801_v39, %v665_v42  ;;  %v819_v49 = vmul.f32 %v818_v40, %v665_v42 }
 0x131   : > { %v787_v52 = vadd.f32 %v786_v47, %v783_v44  ;;  %v803_v53 = vadd.f32 %v802_v48, %v799_v61  ;;  %v820_v54 = vadd.f32 %v819_v49, %v816_v62 }
 0x133   : > { %v791_v55 = vadd.f32 %v790_v45, %v787_v52  ;;  %v807_v57 = vadd.f32 %v806_v1, %v803_v53  ;;  %v824_v58 = vadd.f32 %v823_v50, %v820_v54 }
 0x135   : > { %v793_v56 = vmul.f32 1.442695, %v791_v55  ;;  %v809_v59 = vmul.f32 1.442695, %v807_v57  ;;  %v826_v63 = vmul.f32 1.442695, %v824_v58 }
 0x137   : > { %1216 = vpow2.f32 %v793_v56 }
 0x138   : > { %1218 = vpow2.f32 %v809_v59 }
 0x139   : > { %1220 = vpow2.f32 %v826_v63 }
 0x141   : > { %v1217_v2 = vpop.eup %1216 }
 0x142   : > { %v1219_v4 = vpop.eup %1218  ;;  %v796_v5 = vmul.f32 %v1217_v2, %v795_v0 }
 0x143   : > { %v1221_v6 = vpop.eup %1220  ;;  %v812_v7 = vmul.f32 %v1219_v4, %v811_v60 }
 0x144   : > { %v829_v8 = vmul.f32 %v1221_v6, %v828_v3 }
 0x145   : > { %v813_v9 = vadd.f32 %v812_v7, %v796_v5 }
 0x147   : > { %v830_v10 = vadd.f32 %v829_v8, %v813_v9 }
 0x149   : > { %831 = vst [vmem:[%s293_s0] sm:$0xff] %v830_v10 }
 0x14a   : > { %1325 = shalt.err (!%p1322_p0)
}
 0x14b   : > { %s1326_s11 = scalar_lea.hbm %s1982_s29, 128  ;;  %s1330_s26 = scalar_lea.hbm %s2031_s5, 256 }
 0x14c   : > { %p1327_p1 = scmp.ne.s32.totalorder %s1982_s29, %s1326_s11  ;;  %p1331_p5 = scmp.lt.u32.totalorder %s1982_s29, %s2031_s5 }
 0x14d   : > { %p1332_p4 = scmp.lt.u32.totalorder %s1330_s26, %s1326_s11  ;;  %p1334_p7 = scmp.lt.u32.totalorder %s1326_s11, %s1982_s29 }
 0x14e   : > { %p1328_p11 = pnand %p1327_p1, %p1549_p6 }
 0x14f   : > { %p1333_p8 = por %p1332_p4, %p1331_p5 }
 0x150   : > { %p1329_p2 = pneg %p1328_p11 }
 0x151   : > { %p1335_p12 = por %p1334_p7, %p1333_p8 }
 0x153   : > { %p1336_p9 = pnand %p1335_p12, %p1329_p2 }
 0x155   : > { %1339 = shalt.err (!%p1336_p9)
}
 0x156   : > { %1092 = dma.vmem_to_hbm [thread:$0]  (%p1549_p6), %s1984_s10, 128, %s1982_s29, %s833_s23  }
 0x157 PF: > { %s858_s15 = sand.u32 1, %s1378_s18   ;;  %p2054_p3 = scmp.ne.s32.totalorder %s2038_s25, 0 }
 0x158   : > { %p2055_p13 = scmp.ge.s32.totalorder %s1390_s21, 2  ;;  %s859_s13 = scalar_lea.sflag [#allocation4], %s858_s15 }
 0x15a   : > { %p1112_p10 = pnand %p2055_p13, %p2054_p3 }
 0x15c   : > { %1373 = dma.done.wait (!%p1112_p10), %s859_s13, 128  }
 0x15d   : > { %1375 = vsyncadd (!%p1112_p10), %s859_s13, 4294967168  ;;  %p21_p0 = scmp.ge.s32.totalorder %s1536_s9, 4   ;;  %s2056_s18 = smov %s1382_s19 }
 0x15e   : > { %s2057_s19 = smov %s1386_s20  ;;  %s2058_s20 = smov %s1545_s8 }
 0x15f   : > { %s2059_s21 = smov %s1536_s9  ;;  %23 = sbr.rel (!%p21_p0) target bundleno = 11 (0xb), region = 102 }
 0x166   :  { %864 = vsyncpa [#allocation3], 1 }
 0x167   :  { %866 = vsyncpa [#allocation3 + $0x1], 1 }
 0x168   :  { %867 = vsyncpa [#allocation4], 1 }
 0x169   :  { %869 = vsyncpa [#allocation4 + $0x1], 1 }
 0x16a   :  { %870 = vsyncpa [#allocation5], 1 }
 0x16b   :  { %872 = vsyncpa [#allocation5 + $0x1], 1 }
 0x16c   :  { %873 = vsyncpa [#allocation8], 1 }
 0x16d   :  { %874 = vsyncpa [#allocation11], 1 }

</bundles_post_ra>
